<compile_context>
chip_gen: v7x
topology: tpu7x:2x2x1
jax: 0.10.0
libtpu: 0.0.40
codegen_flags: <defaults>
</compile_context>

<pallas_src>
import functools
import math

import jax
import jax.numpy as jnp
from jax.experimental import pallas as pl
from jax.experimental.pallas import tpu as pltpu

# ----------------------------- model config (scaled-down DistilBERT) ------------------
VOCAB = 512
MAX_POS = 32
BATCH = 2
SEQ = 8
HIDDEN = 128          # real model: 768
HEADS = 2             # real model: 12
HEAD_DIM = HIDDEN // HEADS
FFN = 256             # real model: 3072
LAYERS = 2            # real model: 6
LN_EPS = 1e-12


# ----------------------------- fused encoder kernel -----------------------------------
def _gelu(x):
    # TODO(synk): DistilBERT uses exact erf-GELU; tanh approximation used here
    # (erf lowering on Mosaic not relied upon).
    c = math.sqrt(2.0 / math.pi)
    return 0.5 * x * (1.0 + jnp.tanh(c * (x + 0.044715 * x * x * x)))


def _encoder_kernel(x_ref, mask_ref, emb_g_ref, emb_b_ref,
                    wqkv_ref, bqkv_ref, wo_ref, bo_ref,
                    sa_g_ref, sa_b_ref, w1_ref, b1_ref, w2_ref, b2_ref,
                    out_g_ref, out_b_ref, o_ref,
                    *, num_layers, seq, heads, head_dim, scale, eps):
    """Runs the full encoder for one batch element: x block is (S, D)."""
    d = heads * head_dim

    def layernorm(x, g, b):
        mu = jnp.mean(x, axis=-1, keepdims=True)
        xc = x - mu
        var = jnp.mean(xc * xc, axis=-1, keepdims=True)
        return xc * jax.lax.rsqrt(var + eps) * g + b

    # Embedding sum (done outside) -> LayerNorm.
    h = layernorm(x_ref[...], emb_g_ref[...], emb_b_ref[...])          # (S, D)

    # Compact mask -> additive bias (broadcast over query dim), computed in-VMEM.
    mask_bias = (mask_ref[...].reshape(1, seq) - 1.0) * 1e9            # (1, S)

    for l in range(num_layers):                      # unrolled; 2 layers, tiny weights
        # --- fused QKV projection: one MXU pass with N = 3*D ---
        qkv = (jnp.dot(h, wqkv_ref[l], preferred_element_type=jnp.float32)
               + bqkv_ref[l])                                          # (S, 3D)

        # --- multi-head self-attention, heads via lane slices; output lane-dense ---
        head_ctx = []
        for hd in range(heads):
            q = qkv[:, hd * head_dim:(hd + 1) * head_dim] * scale      # (S, Dh)
            k = qkv[:, d + hd * head_dim:d + (hd + 1) * head_dim]
            v = qkv[:, 2 * d + hd * head_dim:2 * d + (hd + 1) * head_dim]
            s = jax.lax.dot_general(q, k, (((1,), (1,)), ((), ())),
                                    preferred_element_type=jnp.float32)  # (S, S)
            s = s + mask_bias
            smax = jnp.max(s, axis=-1, keepdims=True)
            p = jnp.exp(s - smax)
            p = p * pl.reciprocal(jnp.sum(p, axis=-1, keepdims=True), approx=True)
            head_ctx.append(jnp.dot(p, v, preferred_element_type=jnp.float32))
        ctx = jnp.concatenate(head_ctx, axis=-1)                        # (S, D) lane-dense

        attn = jnp.dot(ctx, wo_ref[l], preferred_element_type=jnp.float32) + bo_ref[l]
        h = layernorm(attn + h, sa_g_ref[l], sa_b_ref[l])               # post-LN

        # --- feed-forward ---
        ff = jnp.dot(h, w1_ref[l], preferred_element_type=jnp.float32) + b1_ref[l]
        ff = _gelu(ff)
        ff = jnp.dot(ff, w2_ref[l], preferred_element_type=jnp.float32) + b2_ref[l]
        h = layernorm(ff + h, out_g_ref[l], out_b_ref[l])

    # mean over sequence (matches last_hidden_state.mean(dim=1), incl. padded tokens)
    pooled = jnp.mean(h, axis=0, keepdims=True)                         # (1, D)
    o_ref[...] = pooled.reshape(1, 1, d).astype(o_ref.dtype)


def _full_spec(arr):
    """Whole-array BlockSpec, same block for every grid step (weights stay resident)."""
    ndim = arr.ndim
    return pl.BlockSpec(arr.shape, lambda i, _n=ndim: (0,) * _n)


# ----------------------------- parameter initialization -------------------------------
def init_params(key):
    scale = 0.02

    def nrm(k, shape):
        return scale * jax.random.normal(k, shape, dtype=jnp.float32)

    keys = iter(jax.random.split(key, 2 + LAYERS * 6))
    word_emb = nrm(next(keys), (VOCAB, HIDDEN))
    pos_emb = nrm(next(keys), (MAX_POS, HIDDEN))

    wqkv, wo, w1, w2 = [], [], [], []
    for _ in range(LAYERS):
        wq = nrm(next(keys), (HIDDEN, HIDDEN))
        wk = nrm(next(keys), (HIDDEN, HIDDEN))
        wv = nrm(next(keys), (HIDDEN, HIDDEN))
        wqkv.append(jnp.concatenate([wq, wk, wv], axis=1))              # (D, 3D)
        wo.append(nrm(next(keys), (HIDDEN, HIDDEN)))
        w1.append(nrm(next(keys), (HIDDEN, FFN)))
        w2.append(nrm(next(keys), (FFN, HIDDEN)))

    return {
        "word_emb": word_emb,
        "pos_emb": pos_emb,
        "emb_ln_g": jnp.ones((1, HIDDEN), jnp.float32),
        "emb_ln_b": jnp.zeros((1, HIDDEN), jnp.float32),
        "wqkv": jnp.stack(wqkv),                                        # (L, D, 3D)
        "bqkv": jnp.zeros((LAYERS, 1, 3 * HIDDEN), jnp.float32),
        "wo": jnp.stack(wo),                                            # (L, D, D)
        "bo": jnp.zeros((LAYERS, 1, HIDDEN), jnp.float32),
        "sa_ln_g": jnp.ones((LAYERS, 1, HIDDEN), jnp.float32),
        "sa_ln_b": jnp.zeros((LAYERS, 1, HIDDEN), jnp.float32),
        "w1": jnp.stack(w1),                                            # (L, D, FFN)
        "b1": jnp.zeros((LAYERS, 1, FFN), jnp.float32),
        "w2": jnp.stack(w2),                                            # (L, FFN, D)
        "b2": jnp.zeros((LAYERS, 1, HIDDEN), jnp.float32),
        "out_ln_g": jnp.ones((LAYERS, 1, HIDDEN), jnp.float32),
        "out_ln_b": jnp.zeros((LAYERS, 1, HIDDEN), jnp.float32),
    }


# ----------------------------- forward pass (LangEncoder.forward) ---------------------
@jax.jit
def lang_encoder_forward(params, input_ids, attention_mask):
    B, S = input_ids.shape
    D = HIDDEN

    # Embedding lookup (gather) is glue in plain JAX; summed word+pos embedding is the
    # kernel input, LayerNorm happens inside the fused kernel.
    emb = params["word_emb"][input_ids] + params["pos_emb"][jnp.arange(S)][None, :, :]
    x = emb.reshape(B * S, D)                                           # (B*S, D)
    mask3 = attention_mask.astype(jnp.float32).reshape(B, 1, S)         # compact mask

    kernel = functools.partial(
        _encoder_kernel,
        num_layers=LAYERS, seq=S, heads=HEADS, head_dim=HEAD_DIM,
        scale=1.0 / math.sqrt(HEAD_DIM), eps=LN_EPS)

    out = pl.pallas_call(
        kernel,
        grid=(B,),
        in_specs=[
            pl.BlockSpec((S, D), lambda i: (i, 0)),          # activations: one batch/step
            pl.BlockSpec((1, 1, S), lambda i: (i, 0, 0)),    # compact mask for this batch
            _full_spec(params["emb_ln_g"]), _full_spec(params["emb_ln_b"]),
            _full_spec(params["wqkv"]), _full_spec(params["bqkv"]),
            _full_spec(params["wo"]), _full_spec(params["bo"]),
            _full_spec(params["sa_ln_g"]), _full_spec(params["sa_ln_b"]),
            _full_spec(params["w1"]), _full_spec(params["b1"]),
            _full_spec(params["w2"]), _full_spec(params["b2"]),
            _full_spec(params["out_ln_g"]), _full_spec(params["out_ln_b"]),
        ],
        out_specs=pl.BlockSpec((1, 1, D), lambda i: (i, 0, 0)),
        out_shape=jax.ShapeDtypeStruct((B, 1, D), jnp.float32),
        compiler_params=pltpu.CompilerParams(dimension_semantics=("parallel",)),
    )(x, mask3,
      params["emb_ln_g"], params["emb_ln_b"],
      params["wqkv"], params["bqkv"], params["wo"], params["bo"],
      params["sa_ln_g"], params["sa_ln_b"],
      params["w1"], params["b1"], params["w2"], params["b2"],
      params["out_ln_g"], params["out_ln_b"])

    return out.reshape(B, D)                                            # (B, D)


# ----------------------------- main ----------------------------------------------------
if __name__ == "__main__":
    key = jax.random.PRNGKey(0)
    pkey, ikey = jax.random.split(key)
    params = init_params(pkey)

    # Synthetic "tokenizer" output: padded token ids + attention mask (lengths 8 and 5).
    # TODO(synk): HuggingFace AutoTokenizer (string -> ids) has no Pallas equivalent.
    input_ids = jax.random.randint(ikey, (BATCH, SEQ), 0, VOCAB, dtype=jnp.int32)
    lengths = jnp.array([SEQ, 5], dtype=jnp.int32)
    attention_mask = (jnp.arange(SEQ)[None, :] < lengths[:, None]).astype(jnp.int32)
    input_ids = input_ids * attention_mask      # zero-out padded positions (like [PAD]=0)

    out = lang_encoder_forward(params, input_ids, attention_mask)
    jax.block_until_ready(out)
    assert out.shape == (BATCH, HIDDEN) and out.dtype == jnp.float32
    assert bool(jnp.all(jnp.isfinite(out)))
    print("KERNEL_OK")
</pallas_src>

<mosaic_0001>
module attributes {stable_mosaic.version = 11 : i64} {
  func.func @_encoder_kernel(%arg0: i32, %arg1: memref<8x128xf32, #tpu.memory_space<vmem>>, %arg2: memref<1x1x8xf32, #tpu.memory_space<vmem>>, %arg3: memref<1x128xf32, #tpu.memory_space<vmem>>, %arg4: memref<1x128xf32, #tpu.memory_space<vmem>>, %arg5: memref<2x128x384xf32, #tpu.memory_space<vmem>>, %arg6: memref<2x1x384xf32, #tpu.memory_space<vmem>>, %arg7: memref<2x128x128xf32, #tpu.memory_space<vmem>>, %arg8: memref<2x1x128xf32, #tpu.memory_space<vmem>>, %arg9: memref<2x1x128xf32, #tpu.memory_space<vmem>>, %arg10: memref<2x1x128xf32, #tpu.memory_space<vmem>>, %arg11: memref<2x128x256xf32, #tpu.memory_space<vmem>>, %arg12: memref<2x1x256xf32, #tpu.memory_space<vmem>>, %arg13: memref<2x256x128xf32, #tpu.memory_space<vmem>>, %arg14: memref<2x1x128xf32, #tpu.memory_space<vmem>>, %arg15: memref<2x1x128xf32, #tpu.memory_space<vmem>>, %arg16: memref<2x1x128xf32, #tpu.memory_space<vmem>>, %arg17: memref<1x1x128xf32, #tpu.memory_space<vmem>>) attributes {dimension_semantics = [#tpu.dimension_semantics<parallel>], iteration_bounds = array<i64: 2>, scalar_prefetch = 0 : i64, scratch_operands = 0 : i64, tpu.core_type = #tpu.core_type<tc>, window_params = [{transform_indices = @transform_0, window_bounds = array<i64: 8, 128>}, {transform_indices = @transform_1, window_bounds = array<i64: 1, 1, 8>}, {pipeline_mode = #tpu.pipeline_mode<synchronous>, transform_indices = @transform_2, window_bounds = array<i64: 1, 128>}, {pipeline_mode = #tpu.pipeline_mode<synchronous>, transform_indices = @transform_3, window_bounds = array<i64: 1, 128>}, {pipeline_mode = #tpu.pipeline_mode<synchronous>, transform_indices = @transform_4, window_bounds = array<i64: 2, 128, 384>}, {pipeline_mode = #tpu.pipeline_mode<synchronous>, transform_indices = @transform_5, window_bounds = array<i64: 2, 1, 384>}, {pipeline_mode = #tpu.pipeline_mode<synchronous>, transform_indices = @transform_6, window_bounds = array<i64: 2, 128, 128>}, {pipeline_mode = #tpu.pipeline_mode<synchronous>, transform_indices = @transform_7, window_bounds = array<i64: 2, 1, 128>}, {pipeline_mode = #tpu.pipeline_mode<synchronous>, transform_indices = @transform_8, window_bounds = array<i64: 2, 1, 128>}, {pipeline_mode = #tpu.pipeline_mode<synchronous>, transform_indices = @transform_9, window_bounds = array<i64: 2, 1, 128>}, {pipeline_mode = #tpu.pipeline_mode<synchronous>, transform_indices = @transform_10, window_bounds = array<i64: 2, 128, 256>}, {pipeline_mode = #tpu.pipeline_mode<synchronous>, transform_indices = @transform_11, window_bounds = array<i64: 2, 1, 256>}, {pipeline_mode = #tpu.pipeline_mode<synchronous>, transform_indices = @transform_12, window_bounds = array<i64: 2, 256, 128>}, {pipeline_mode = #tpu.pipeline_mode<synchronous>, transform_indices = @transform_13, window_bounds = array<i64: 2, 1, 128>}, {pipeline_mode = #tpu.pipeline_mode<synchronous>, transform_indices = @transform_14, window_bounds = array<i64: 2, 1, 128>}, {pipeline_mode = #tpu.pipeline_mode<synchronous>, transform_indices = @transform_15, window_bounds = array<i64: 2, 1, 128>}, {transform_indices = @transform_16, window_bounds = array<i64: 1, 1, 128>}]} {
    %c0 = arith.constant 0 : index
    %c0_0 = arith.constant 0 : index
    %0 = vector.load %arg1[%c0, %c0_0] : memref<8x128xf32, #tpu.memory_space<vmem>>, vector<8x128xf32>
    %c0_1 = arith.constant 0 : index
    %c0_2 = arith.constant 0 : index
    %1 = vector.load %arg3[%c0_1, %c0_2] : memref<1x128xf32, #tpu.memory_space<vmem>>, vector<1x128xf32>
    %c0_3 = arith.constant 0 : index
    %c0_4 = arith.constant 0 : index
    %2 = vector.load %arg4[%c0_3, %c0_4] : memref<1x128xf32, #tpu.memory_space<vmem>>, vector<1x128xf32>
    %cst = arith.constant dense<0.000000e+00> : vector<8xf32>
    %3 = vector.multi_reduction <add>, %0, %cst [1] : vector<8x128xf32> to vector<8xf32>
    %4 = vector.shape_cast %3 : vector<8xf32> to vector<8x1xf32>
    %cst_5 = arith.constant 1.280000e+02 : f32
    %5 = vector.broadcast %cst_5 : f32 to vector<8x1xf32>
    %6 = arith.divf %4, %5 : vector<8x1xf32>
    %7 = vector.broadcast %6 : vector<8x1xf32> to vector<8x128xf32>
    %8 = arith.subf %0, %7 : vector<8x128xf32>
    %9 = arith.mulf %8, %8 : vector<8x128xf32>
    %cst_6 = arith.constant dense<0.000000e+00> : vector<8xf32>
    %10 = vector.multi_reduction <add>, %9, %cst_6 [1] : vector<8x128xf32> to vector<8xf32>
    %11 = vector.shape_cast %10 : vector<8xf32> to vector<8x1xf32>
    %cst_7 = arith.constant 1.280000e+02 : f32
    %12 = vector.broadcast %cst_7 : f32 to vector<8x1xf32>
    %13 = arith.divf %11, %12 : vector<8x1xf32>
    %cst_8 = arith.constant 9.99999996E-13 : f32
    %14 = vector.broadcast %cst_8 : f32 to vector<8x1xf32>
    %15 = arith.addf %13, %14 : vector<8x1xf32>
    %16 = math.rsqrt %15 : vector<8x1xf32>
    %17 = vector.broadcast %16 : vector<8x1xf32> to vector<8x128xf32>
    %18 = arith.mulf %8, %17 : vector<8x128xf32>
    %19 = vector.broadcast %1 : vector<1x128xf32> to vector<8x128xf32>
    %20 = arith.mulf %18, %19 : vector<8x128xf32>
    %21 = vector.broadcast %2 : vector<1x128xf32> to vector<8x128xf32>
    %22 = arith.addf %20, %21 : vector<8x128xf32>
    %c0_9 = arith.constant 0 : index
    %c0_10 = arith.constant 0 : index
    %c0_11 = arith.constant 0 : index
    %23 = vector.load %arg2[%c0_9, %c0_10, %c0_11] : memref<1x1x8xf32, #tpu.memory_space<vmem>>, vector<1x1x8xf32>
    %24 = vector.shape_cast %23 : vector<1x1x8xf32> to vector<1x8xf32>
    %cst_12 = arith.constant 1.000000e+00 : f32
    %25 = vector.broadcast %cst_12 : f32 to vector<1x8xf32>
    %26 = arith.subf %24, %25 : vector<1x8xf32>
    %cst_13 = arith.constant 1.000000e+09 : f32
    %27 = vector.broadcast %cst_13 : f32 to vector<1x8xf32>
    %28 = arith.mulf %26, %27 : vector<1x8xf32>
    %c0_14 = arith.constant 0 : index
    %c0_15 = arith.constant 0 : index
    %c0_16 = arith.constant 0 : index
    %29 = vector.load %arg5[%c0_14, %c0_15, %c0_16] : memref<2x128x384xf32, #tpu.memory_space<vmem>>, vector<1x128x384xf32>
    %30 = vector.shape_cast %29 : vector<1x128x384xf32> to vector<128x384xf32>
    %cst_17 = arith.constant dense<0.000000e+00> : vector<8x384xf32>
    %31 = tpu.matmul %22, %30, %cst_17 {dimension_numbers = #tpu.dot_dimension_numbers<[1], [0], [0], [1], [0, 0, 1, 1], [], []>} : vector<8x128xf32>, vector<128x384xf32>, vector<8x384xf32> -> vector<8x384xf32>
    %c0_18 = arith.constant 0 : index
    %c0_19 = arith.constant 0 : index
    %c0_20 = arith.constant 0 : index
    %32 = vector.load %arg6[%c0_18, %c0_19, %c0_20] : memref<2x1x384xf32, #tpu.memory_space<vmem>>, vector<1x1x384xf32>
    %33 = vector.shape_cast %32 : vector<1x1x384xf32> to vector<1x384xf32>
    %34 = vector.broadcast %33 : vector<1x384xf32> to vector<8x384xf32>
    %35 = arith.addf %31, %34 : vector<8x384xf32>
    %36 = vector.extract_strided_slice %35 {offsets = [0, 0], sizes = [8, 64], strides = [1, 1]} : vector<8x384xf32> to vector<8x64xf32>
    %cst_21 = arith.constant 1.250000e-01 : f32
    %37 = vector.broadcast %cst_21 : f32 to vector<8x64xf32>
    %38 = arith.mulf %36, %37 : vector<8x64xf32>
    %39 = vector.extract_strided_slice %35 {offsets = [0, 128], sizes = [8, 64], strides = [1, 1]} : vector<8x384xf32> to vector<8x64xf32>
    %40 = vector.extract_strided_slice %35 {offsets = [0, 256], sizes = [8, 64], strides = [1, 1]} : vector<8x384xf32> to vector<8x64xf32>
    %cst_22 = arith.constant dense<0.000000e+00> : vector<8x8xf32>
    %41 = tpu.matmul %38, %39, %cst_22 {dimension_numbers = #tpu.dot_dimension_numbers<[1], [1], [0], [0], [0, 0, 1, 0], [], []>} : vector<8x64xf32>, vector<8x64xf32>, vector<8x8xf32> -> vector<8x8xf32>
    %42 = vector.broadcast %28 : vector<1x8xf32> to vector<8x8xf32>
    %43 = arith.addf %41, %42 : vector<8x8xf32>
    %cst_23 = arith.constant dense<0xFF800000> : vector<8xf32>
    %44 = vector.multi_reduction <maximumf>, %43, %cst_23 [1] : vector<8x8xf32> to vector<8xf32>
    %45 = vector.shape_cast %44 : vector<8xf32> to vector<8x1xf32>
    %46 = vector.broadcast %45 : vector<8x1xf32> to vector<8x8xf32>
    %47 = arith.subf %43, %46 : vector<8x8xf32>
    %48 = math.exp %47 : vector<8x8xf32>
    %cst_24 = arith.constant dense<0.000000e+00> : vector<8xf32>
    %49 = vector.multi_reduction <add>, %48, %cst_24 [1] : vector<8x8xf32> to vector<8xf32>
    %50 = vector.shape_cast %49 : vector<8xf32> to vector<8x1xf32>
    %51 = tpu.reciprocal %50 {approx = true} : vector<8x1xf32> -> vector<8x1xf32>
    %52 = vector.broadcast %51 : vector<8x1xf32> to vector<8x8xf32>
    %53 = arith.mulf %48, %52 : vector<8x8xf32>
    %cst_25 = arith.constant dense<0.000000e+00> : vector<8x64xf32>
    %54 = tpu.matmul %53, %40, %cst_25 {dimension_numbers = #tpu.dot_dimension_numbers<[1], [0], [0], [1], [0, 0, 1, 1], [], []>} : vector<8x8xf32>, vector<8x64xf32>, vector<8x64xf32> -> vector<8x64xf32>
    %55 = vector.extract_strided_slice %35 {offsets = [0, 64], sizes = [8, 64], strides = [1, 1]} : vector<8x384xf32> to vector<8x64xf32>
    %cst_26 = arith.constant 1.250000e-01 : f32
    %56 = vector.broadcast %cst_26 : f32 to vector<8x64xf32>
    %57 = arith.mulf %55, %56 : vector<8x64xf32>
    %58 = vector.extract_strided_slice %35 {offsets = [0, 192], sizes = [8, 64], strides = [1, 1]} : vector<8x384xf32> to vector<8x64xf32>
    %59 = vector.extract_strided_slice %35 {offsets = [0, 320], sizes = [8, 64], strides = [1, 1]} : vector<8x384xf32> to vector<8x64xf32>
    %cst_27 = arith.constant dense<0.000000e+00> : vector<8x8xf32>
    %60 = tpu.matmul %57, %58, %cst_27 {dimension_numbers = #tpu.dot_dimension_numbers<[1], [1], [0], [0], [0, 0, 1, 0], [], []>} : vector<8x64xf32>, vector<8x64xf32>, vector<8x8xf32> -> vector<8x8xf32>
    %61 = vector.broadcast %28 : vector<1x8xf32> to vector<8x8xf32>
    %62 = arith.addf %60, %61 : vector<8x8xf32>
    %cst_28 = arith.constant dense<0xFF800000> : vector<8xf32>
    %63 = vector.multi_reduction <maximumf>, %62, %cst_28 [1] : vector<8x8xf32> to vector<8xf32>
    %64 = vector.shape_cast %63 : vector<8xf32> to vector<8x1xf32>
    %65 = vector.broadcast %64 : vector<8x1xf32> to vector<8x8xf32>
    %66 = arith.subf %62, %65 : vector<8x8xf32>
    %67 = math.exp %66 : vector<8x8xf32>
    %cst_29 = arith.constant dense<0.000000e+00> : vector<8xf32>
    %68 = vector.multi_reduction <add>, %67, %cst_29 [1] : vector<8x8xf32> to vector<8xf32>
    %69 = vector.shape_cast %68 : vector<8xf32> to vector<8x1xf32>
    %70 = tpu.reciprocal %69 {approx = true} : vector<8x1xf32> -> vector<8x1xf32>
    %71 = vector.broadcast %70 : vector<8x1xf32> to vector<8x8xf32>
    %72 = arith.mulf %67, %71 : vector<8x8xf32>
    %cst_30 = arith.constant dense<0.000000e+00> : vector<8x64xf32>
    %73 = tpu.matmul %72, %59, %cst_30 {dimension_numbers = #tpu.dot_dimension_numbers<[1], [0], [0], [1], [0, 0, 1, 1], [], []>} : vector<8x8xf32>, vector<8x64xf32>, vector<8x64xf32> -> vector<8x64xf32>
    %74 = tpu.concatenate %54, %73 in 1 : vector<8x64xf32>, vector<8x64xf32> -> vector<8x128xf32>
    %c0_31 = arith.constant 0 : index
    %c0_32 = arith.constant 0 : index
    %c0_33 = arith.constant 0 : index
    %75 = vector.load %arg7[%c0_31, %c0_32, %c0_33] : memref<2x128x128xf32, #tpu.memory_space<vmem>>, vector<1x128x128xf32>
    %76 = vector.shape_cast %75 : vector<1x128x128xf32> to vector<128x128xf32>
    %cst_34 = arith.constant dense<0.000000e+00> : vector<8x128xf32>
    %77 = tpu.matmul %74, %76, %cst_34 {dimension_numbers = #tpu.dot_dimension_numbers<[1], [0], [0], [1], [0, 0, 1, 1], [], []>} : vector<8x128xf32>, vector<128x128xf32>, vector<8x128xf32> -> vector<8x128xf32>
    %c0_35 = arith.constant 0 : index
    %c0_36 = arith.constant 0 : index
    %c0_37 = arith.constant 0 : index
    %78 = vector.load %arg8[%c0_35, %c0_36, %c0_37] : memref<2x1x128xf32, #tpu.memory_space<vmem>>, vector<1x1x128xf32>
    %79 = vector.shape_cast %78 : vector<1x1x128xf32> to vector<1x128xf32>
    %80 = vector.broadcast %79 : vector<1x128xf32> to vector<8x128xf32>
    %81 = arith.addf %77, %80 : vector<8x128xf32>
    %82 = arith.addf %81, %22 : vector<8x128xf32>
    %c0_38 = arith.constant 0 : index
    %c0_39 = arith.constant 0 : index
    %c0_40 = arith.constant 0 : index
    %83 = vector.load %arg9[%c0_38, %c0_39, %c0_40] : memref<2x1x128xf32, #tpu.memory_space<vmem>>, vector<1x1x128xf32>
    %84 = vector.shape_cast %83 : vector<1x1x128xf32> to vector<1x128xf32>
    %c0_41 = arith.constant 0 : index
    %c0_42 = arith.constant 0 : index
    %c0_43 = arith.constant 0 : index
    %85 = vector.load %arg10[%c0_41, %c0_42, %c0_43] : memref<2x1x128xf32, #tpu.memory_space<vmem>>, vector<1x1x128xf32>
    %86 = vector.shape_cast %85 : vector<1x1x128xf32> to vector<1x128xf32>
    %cst_44 = arith.constant dense<0.000000e+00> : vector<8xf32>
    %87 = vector.multi_reduction <add>, %82, %cst_44 [1] : vector<8x128xf32> to vector<8xf32>
    %88 = vector.shape_cast %87 : vector<8xf32> to vector<8x1xf32>
    %cst_45 = arith.constant 1.280000e+02 : f32
    %89 = vector.broadcast %cst_45 : f32 to vector<8x1xf32>
    %90 = arith.divf %88, %89 : vector<8x1xf32>
    %91 = vector.broadcast %90 : vector<8x1xf32> to vector<8x128xf32>
    %92 = arith.subf %82, %91 : vector<8x128xf32>
    %93 = arith.mulf %92, %92 : vector<8x128xf32>
    %cst_46 = arith.constant dense<0.000000e+00> : vector<8xf32>
    %94 = vector.multi_reduction <add>, %93, %cst_46 [1] : vector<8x128xf32> to vector<8xf32>
    %95 = vector.shape_cast %94 : vector<8xf32> to vector<8x1xf32>
    %cst_47 = arith.constant 1.280000e+02 : f32
    %96 = vector.broadcast %cst_47 : f32 to vector<8x1xf32>
    %97 = arith.divf %95, %96 : vector<8x1xf32>
    %cst_48 = arith.constant 9.99999996E-13 : f32
    %98 = vector.broadcast %cst_48 : f32 to vector<8x1xf32>
    %99 = arith.addf %97, %98 : vector<8x1xf32>
    %100 = math.rsqrt %99 : vector<8x1xf32>
    %101 = vector.broadcast %100 : vector<8x1xf32> to vector<8x128xf32>
    %102 = arith.mulf %92, %101 : vector<8x128xf32>
    %103 = vector.broadcast %84 : vector<1x128xf32> to vector<8x128xf32>
    %104 = arith.mulf %102, %103 : vector<8x128xf32>
    %105 = vector.broadcast %86 : vector<1x128xf32> to vector<8x128xf32>
    %106 = arith.addf %104, %105 : vector<8x128xf32>
    %c0_49 = arith.constant 0 : index
    %c0_50 = arith.constant 0 : index
    %c0_51 = arith.constant 0 : index
    %107 = vector.load %arg11[%c0_49, %c0_50, %c0_51] : memref<2x128x256xf32, #tpu.memory_space<vmem>>, vector<1x128x256xf32>
    %108 = vector.shape_cast %107 : vector<1x128x256xf32> to vector<128x256xf32>
    %cst_52 = arith.constant dense<0.000000e+00> : vector<8x256xf32>
    %109 = tpu.matmul %106, %108, %cst_52 {dimension_numbers = #tpu.dot_dimension_numbers<[1], [0], [0], [1], [0, 0, 1, 1], [], []>} : vector<8x128xf32>, vector<128x256xf32>, vector<8x256xf32> -> vector<8x256xf32>
    %c0_53 = arith.constant 0 : index
    %c0_54 = arith.constant 0 : index
    %c0_55 = arith.constant 0 : index
    %110 = vector.load %arg12[%c0_53, %c0_54, %c0_55] : memref<2x1x256xf32, #tpu.memory_space<vmem>>, vector<1x1x256xf32>
    %111 = vector.shape_cast %110 : vector<1x1x256xf32> to vector<1x256xf32>
    %112 = vector.broadcast %111 : vector<1x256xf32> to vector<8x256xf32>
    %113 = arith.addf %109, %112 : vector<8x256xf32>
    %cst_56 = arith.constant 5.000000e-01 : f32
    %114 = vector.broadcast %cst_56 : f32 to vector<8x256xf32>
    %115 = arith.mulf %114, %113 : vector<8x256xf32>
    %cst_57 = arith.constant 4.471500e-02 : f32
    %116 = vector.broadcast %cst_57 : f32 to vector<8x256xf32>
    %117 = arith.mulf %116, %113 : vector<8x256xf32>
    %118 = arith.mulf %117, %113 : vector<8x256xf32>
    %119 = arith.mulf %118, %113 : vector<8x256xf32>
    %120 = arith.addf %113, %119 : vector<8x256xf32>
    %cst_58 = arith.constant 0.797884583 : f32
    %121 = vector.broadcast %cst_58 : f32 to vector<8x256xf32>
    %122 = arith.mulf %121, %120 : vector<8x256xf32>
    %123 = math.tanh %122 : vector<8x256xf32>
    %cst_59 = arith.constant 1.000000e+00 : f32
    %124 = vector.broadcast %cst_59 : f32 to vector<8x256xf32>
    %125 = arith.addf %124, %123 : vector<8x256xf32>
    %126 = arith.mulf %115, %125 : vector<8x256xf32>
    %c0_60 = arith.constant 0 : index
    %c0_61 = arith.constant 0 : index
    %c0_62 = arith.constant 0 : index
    %127 = vector.load %arg13[%c0_60, %c0_61, %c0_62] : memref<2x256x128xf32, #tpu.memory_space<vmem>>, vector<1x256x128xf32>
    %128 = vector.shape_cast %127 : vector<1x256x128xf32> to vector<256x128xf32>
    %cst_63 = arith.constant dense<0.000000e+00> : vector<8x128xf32>
    %129 = tpu.matmul %126, %128, %cst_63 {dimension_numbers = #tpu.dot_dimension_numbers<[1], [0], [0], [1], [0, 0, 1, 1], [], []>} : vector<8x256xf32>, vector<256x128xf32>, vector<8x128xf32> -> vector<8x128xf32>
    %c0_64 = arith.constant 0 : index
    %c0_65 = arith.constant 0 : index
    %c0_66 = arith.constant 0 : index
    %130 = vector.load %arg14[%c0_64, %c0_65, %c0_66] : memref<2x1x128xf32, #tpu.memory_space<vmem>>, vector<1x1x128xf32>
    %131 = vector.shape_cast %130 : vector<1x1x128xf32> to vector<1x128xf32>
    %132 = vector.broadcast %131 : vector<1x128xf32> to vector<8x128xf32>
    %133 = arith.addf %129, %132 : vector<8x128xf32>
    %134 = arith.addf %133, %106 : vector<8x128xf32>
    %c0_67 = arith.constant 0 : index
    %c0_68 = arith.constant 0 : index
    %c0_69 = arith.constant 0 : index
    %135 = vector.load %arg15[%c0_67, %c0_68, %c0_69] : memref<2x1x128xf32, #tpu.memory_space<vmem>>, vector<1x1x128xf32>
    %136 = vector.shape_cast %135 : vector<1x1x128xf32> to vector<1x128xf32>
    %c0_70 = arith.constant 0 : index
    %c0_71 = arith.constant 0 : index
    %c0_72 = arith.constant 0 : index
    %137 = vector.load %arg16[%c0_70, %c0_71, %c0_72] : memref<2x1x128xf32, #tpu.memory_space<vmem>>, vector<1x1x128xf32>
    %138 = vector.shape_cast %137 : vector<1x1x128xf32> to vector<1x128xf32>
    %cst_73 = arith.constant dense<0.000000e+00> : vector<8xf32>
    %139 = vector.multi_reduction <add>, %134, %cst_73 [1] : vector<8x128xf32> to vector<8xf32>
    %140 = vector.shape_cast %139 : vector<8xf32> to vector<8x1xf32>
    %cst_74 = arith.constant 1.280000e+02 : f32
    %141 = vector.broadcast %cst_74 : f32 to vector<8x1xf32>
    %142 = arith.divf %140, %141 : vector<8x1xf32>
    %143 = vector.broadcast %142 : vector<8x1xf32> to vector<8x128xf32>
    %144 = arith.subf %134, %143 : vector<8x128xf32>
    %145 = arith.mulf %144, %144 : vector<8x128xf32>
    %cst_75 = arith.constant dense<0.000000e+00> : vector<8xf32>
    %146 = vector.multi_reduction <add>, %145, %cst_75 [1] : vector<8x128xf32> to vector<8xf32>
    %147 = vector.shape_cast %146 : vector<8xf32> to vector<8x1xf32>
    %cst_76 = arith.constant 1.280000e+02 : f32
    %148 = vector.broadcast %cst_76 : f32 to vector<8x1xf32>
    %149 = arith.divf %147, %148 : vector<8x1xf32>
    %cst_77 = arith.constant 9.99999996E-13 : f32
    %150 = vector.broadcast %cst_77 : f32 to vector<8x1xf32>
    %151 = arith.addf %149, %150 : vector<8x1xf32>
    %152 = math.rsqrt %151 : vector<8x1xf32>
    %153 = vector.broadcast %152 : vector<8x1xf32> to vector<8x128xf32>
    %154 = arith.mulf %144, %153 : vector<8x128xf32>
    %155 = vector.broadcast %136 : vector<1x128xf32> to vector<8x128xf32>
    %156 = arith.mulf %154, %155 : vector<8x128xf32>
    %157 = vector.broadcast %138 : vector<1x128xf32> to vector<8x128xf32>
    %158 = arith.addf %156, %157 : vector<8x128xf32>
    %c1 = arith.constant 1 : index
    %c0_78 = arith.constant 0 : index
    %c0_79 = arith.constant 0 : index
    %159 = vector.load %arg5[%c1, %c0_78, %c0_79] : memref<2x128x384xf32, #tpu.memory_space<vmem>>, vector<1x128x384xf32>
    %160 = vector.shape_cast %159 : vector<1x128x384xf32> to vector<128x384xf32>
    %cst_80 = arith.constant dense<0.000000e+00> : vector<8x384xf32>
    %161 = tpu.matmul %158, %160, %cst_80 {dimension_numbers = #tpu.dot_dimension_numbers<[1], [0], [0], [1], [0, 0, 1, 1], [], []>} : vector<8x128xf32>, vector<128x384xf32>, vector<8x384xf32> -> vector<8x384xf32>
    %c1_81 = arith.constant 1 : index
    %c0_82 = arith.constant 0 : index
    %c0_83 = arith.constant 0 : index
    %162 = vector.load %arg6[%c1_81, %c0_82, %c0_83] : memref<2x1x384xf32, #tpu.memory_space<vmem>>, vector<1x1x384xf32>
    %163 = vector.shape_cast %162 : vector<1x1x384xf32> to vector<1x384xf32>
    %164 = vector.broadcast %163 : vector<1x384xf32> to vector<8x384xf32>
    %165 = arith.addf %161, %164 : vector<8x384xf32>
    %166 = vector.extract_strided_slice %165 {offsets = [0, 0], sizes = [8, 64], strides = [1, 1]} : vector<8x384xf32> to vector<8x64xf32>
    %cst_84 = arith.constant 1.250000e-01 : f32
    %167 = vector.broadcast %cst_84 : f32 to vector<8x64xf32>
    %168 = arith.mulf %166, %167 : vector<8x64xf32>
    %169 = vector.extract_strided_slice %165 {offsets = [0, 128], sizes = [8, 64], strides = [1, 1]} : vector<8x384xf32> to vector<8x64xf32>
    %170 = vector.extract_strided_slice %165 {offsets = [0, 256], sizes = [8, 64], strides = [1, 1]} : vector<8x384xf32> to vector<8x64xf32>
    %cst_85 = arith.constant dense<0.000000e+00> : vector<8x8xf32>
    %171 = tpu.matmul %168, %169, %cst_85 {dimension_numbers = #tpu.dot_dimension_numbers<[1], [1], [0], [0], [0, 0, 1, 0], [], []>} : vector<8x64xf32>, vector<8x64xf32>, vector<8x8xf32> -> vector<8x8xf32>
    %172 = vector.broadcast %28 : vector<1x8xf32> to vector<8x8xf32>
    %173 = arith.addf %171, %172 : vector<8x8xf32>
    %cst_86 = arith.constant dense<0xFF800000> : vector<8xf32>
    %174 = vector.multi_reduction <maximumf>, %173, %cst_86 [1] : vector<8x8xf32> to vector<8xf32>
    %175 = vector.shape_cast %174 : vector<8xf32> to vector<8x1xf32>
    %176 = vector.broadcast %175 : vector<8x1xf32> to vector<8x8xf32>
    %177 = arith.subf %173, %176 : vector<8x8xf32>
    %178 = math.exp %177 : vector<8x8xf32>
    %cst_87 = arith.constant dense<0.000000e+00> : vector<8xf32>
    %179 = vector.multi_reduction <add>, %178, %cst_87 [1] : vector<8x8xf32> to vector<8xf32>
    %180 = vector.shape_cast %179 : vector<8xf32> to vector<8x1xf32>
    %181 = tpu.reciprocal %180 {approx = true} : vector<8x1xf32> -> vector<8x1xf32>
    %182 = vector.broadcast %181 : vector<8x1xf32> to vector<8x8xf32>
    %183 = arith.mulf %178, %182 : vector<8x8xf32>
    %cst_88 = arith.constant dense<0.000000e+00> : vector<8x64xf32>
    %184 = tpu.matmul %183, %170, %cst_88 {dimension_numbers = #tpu.dot_dimension_numbers<[1], [0], [0], [1], [0, 0, 1, 1], [], []>} : vector<8x8xf32>, vector<8x64xf32>, vector<8x64xf32> -> vector<8x64xf32>
    %185 = vector.extract_strided_slice %165 {offsets = [0, 64], sizes = [8, 64], strides = [1, 1]} : vector<8x384xf32> to vector<8x64xf32>
    %cst_89 = arith.constant 1.250000e-01 : f32
    %186 = vector.broadcast %cst_89 : f32 to vector<8x64xf32>
    %187 = arith.mulf %185, %186 : vector<8x64xf32>
    %188 = vector.extract_strided_slice %165 {offsets = [0, 192], sizes = [8, 64], strides = [1, 1]} : vector<8x384xf32> to vector<8x64xf32>
    %189 = vector.extract_strided_slice %165 {offsets = [0, 320], sizes = [8, 64], strides = [1, 1]} : vector<8x384xf32> to vector<8x64xf32>
    %cst_90 = arith.constant dense<0.000000e+00> : vector<8x8xf32>
    %190 = tpu.matmul %187, %188, %cst_90 {dimension_numbers = #tpu.dot_dimension_numbers<[1], [1], [0], [0], [0, 0, 1, 0], [], []>} : vector<8x64xf32>, vector<8x64xf32>, vector<8x8xf32> -> vector<8x8xf32>
    %191 = vector.broadcast %28 : vector<1x8xf32> to vector<8x8xf32>
    %192 = arith.addf %190, %191 : vector<8x8xf32>
    %cst_91 = arith.constant dense<0xFF800000> : vector<8xf32>
    %193 = vector.multi_reduction <maximumf>, %192, %cst_91 [1] : vector<8x8xf32> to vector<8xf32>
    %194 = vector.shape_cast %193 : vector<8xf32> to vector<8x1xf32>
    %195 = vector.broadcast %194 : vector<8x1xf32> to vector<8x8xf32>
    %196 = arith.subf %192, %195 : vector<8x8xf32>
    %197 = math.exp %196 : vector<8x8xf32>
    %cst_92 = arith.constant dense<0.000000e+00> : vector<8xf32>
    %198 = vector.multi_reduction <add>, %197, %cst_92 [1] : vector<8x8xf32> to vector<8xf32>
    %199 = vector.shape_cast %198 : vector<8xf32> to vector<8x1xf32>
    %200 = tpu.reciprocal %199 {approx = true} : vector<8x1xf32> -> vector<8x1xf32>
    %201 = vector.broadcast %200 : vector<8x1xf32> to vector<8x8xf32>
    %202 = arith.mulf %197, %201 : vector<8x8xf32>
    %cst_93 = arith.constant dense<0.000000e+00> : vector<8x64xf32>
    %203 = tpu.matmul %202, %189, %cst_93 {dimension_numbers = #tpu.dot_dimension_numbers<[1], [0], [0], [1], [0, 0, 1, 1], [], []>} : vector<8x8xf32>, vector<8x64xf32>, vector<8x64xf32> -> vector<8x64xf32>
    %204 = tpu.concatenate %184, %203 in 1 : vector<8x64xf32>, vector<8x64xf32> -> vector<8x128xf32>
    %c1_94 = arith.constant 1 : index
    %c0_95 = arith.constant 0 : index
    %c0_96 = arith.constant 0 : index
    %205 = vector.load %arg7[%c1_94, %c0_95, %c0_96] : memref<2x128x128xf32, #tpu.memory_space<vmem>>, vector<1x128x128xf32>
    %206 = vector.shape_cast %205 : vector<1x128x128xf32> to vector<128x128xf32>
    %cst_97 = arith.constant dense<0.000000e+00> : vector<8x128xf32>
    %207 = tpu.matmul %204, %206, %cst_97 {dimension_numbers = #tpu.dot_dimension_numbers<[1], [0], [0], [1], [0, 0, 1, 1], [], []>} : vector<8x128xf32>, vector<128x128xf32>, vector<8x128xf32> -> vector<8x128xf32>
    %c1_98 = arith.constant 1 : index
    %c0_99 = arith.constant 0 : index
    %c0_100 = arith.constant 0 : index
    %208 = vector.load %arg8[%c1_98, %c0_99, %c0_100] : memref<2x1x128xf32, #tpu.memory_space<vmem>>, vector<1x1x128xf32>
    %209 = vector.shape_cast %208 : vector<1x1x128xf32> to vector<1x128xf32>
    %210 = vector.broadcast %209 : vector<1x128xf32> to vector<8x128xf32>
    %211 = arith.addf %207, %210 : vector<8x128xf32>
    %212 = arith.addf %211, %158 : vector<8x128xf32>
    %c1_101 = arith.constant 1 : index
    %c0_102 = arith.constant 0 : index
    %c0_103 = arith.constant 0 : index
    %213 = vector.load %arg9[%c1_101, %c0_102, %c0_103] : memref<2x1x128xf32, #tpu.memory_space<vmem>>, vector<1x1x128xf32>
    %214 = vector.shape_cast %213 : vector<1x1x128xf32> to vector<1x128xf32>
    %c1_104 = arith.constant 1 : index
    %c0_105 = arith.constant 0 : index
    %c0_106 = arith.constant 0 : index
    %215 = vector.load %arg10[%c1_104, %c0_105, %c0_106] : memref<2x1x128xf32, #tpu.memory_space<vmem>>, vector<1x1x128xf32>
    %216 = vector.shape_cast %215 : vector<1x1x128xf32> to vector<1x128xf32>
    %cst_107 = arith.constant dense<0.000000e+00> : vector<8xf32>
    %217 = vector.multi_reduction <add>, %212, %cst_107 [1] : vector<8x128xf32> to vector<8xf32>
    %218 = vector.shape_cast %217 : vector<8xf32> to vector<8x1xf32>
    %cst_108 = arith.constant 1.280000e+02 : f32
    %219 = vector.broadcast %cst_108 : f32 to vector<8x1xf32>
    %220 = arith.divf %218, %219 : vector<8x1xf32>
    %221 = vector.broadcast %220 : vector<8x1xf32> to vector<8x128xf32>
    %222 = arith.subf %212, %221 : vector<8x128xf32>
    %223 = arith.mulf %222, %222 : vector<8x128xf32>
    %cst_109 = arith.constant dense<0.000000e+00> : vector<8xf32>
    %224 = vector.multi_reduction <add>, %223, %cst_109 [1] : vector<8x128xf32> to vector<8xf32>
    %225 = vector.shape_cast %224 : vector<8xf32> to vector<8x1xf32>
    %cst_110 = arith.constant 1.280000e+02 : f32
    %226 = vector.broadcast %cst_110 : f32 to vector<8x1xf32>
    %227 = arith.divf %225, %226 : vector<8x1xf32>
    %cst_111 = arith.constant 9.99999996E-13 : f32
    %228 = vector.broadcast %cst_111 : f32 to vector<8x1xf32>
    %229 = arith.addf %227, %228 : vector<8x1xf32>
    %230 = math.rsqrt %229 : vector<8x1xf32>
    %231 = vector.broadcast %230 : vector<8x1xf32> to vector<8x128xf32>
    %232 = arith.mulf %222, %231 : vector<8x128xf32>
    %233 = vector.broadcast %214 : vector<1x128xf32> to vector<8x128xf32>
    %234 = arith.mulf %232, %233 : vector<8x128xf32>
    %235 = vector.broadcast %216 : vector<1x128xf32> to vector<8x128xf32>
    %236 = arith.addf %234, %235 : vector<8x128xf32>
    %c1_112 = arith.constant 1 : index
    %c0_113 = arith.constant 0 : index
    %c0_114 = arith.constant 0 : index
    %237 = vector.load %arg11[%c1_112, %c0_113, %c0_114] : memref<2x128x256xf32, #tpu.memory_space<vmem>>, vector<1x128x256xf32>
    %238 = vector.shape_cast %237 : vector<1x128x256xf32> to vector<128x256xf32>
    %cst_115 = arith.constant dense<0.000000e+00> : vector<8x256xf32>
    %239 = tpu.matmul %236, %238, %cst_115 {dimension_numbers = #tpu.dot_dimension_numbers<[1], [0], [0], [1], [0, 0, 1, 1], [], []>} : vector<8x128xf32>, vector<128x256xf32>, vector<8x256xf32> -> vector<8x256xf32>
    %c1_116 = arith.constant 1 : index
    %c0_117 = arith.constant 0 : index
    %c0_118 = arith.constant 0 : index
    %240 = vector.load %arg12[%c1_116, %c0_117, %c0_118] : memref<2x1x256xf32, #tpu.memory_space<vmem>>, vector<1x1x256xf32>
    %241 = vector.shape_cast %240 : vector<1x1x256xf32> to vector<1x256xf32>
    %242 = vector.broadcast %241 : vector<1x256xf32> to vector<8x256xf32>
    %243 = arith.addf %239, %242 : vector<8x256xf32>
    %cst_119 = arith.constant 5.000000e-01 : f32
    %244 = vector.broadcast %cst_119 : f32 to vector<8x256xf32>
    %245 = arith.mulf %244, %243 : vector<8x256xf32>
    %cst_120 = arith.constant 4.471500e-02 : f32
    %246 = vector.broadcast %cst_120 : f32 to vector<8x256xf32>
    %247 = arith.mulf %246, %243 : vector<8x256xf32>
    %248 = arith.mulf %247, %243 : vector<8x256xf32>
    %249 = arith.mulf %248, %243 : vector<8x256xf32>
    %250 = arith.addf %243, %249 : vector<8x256xf32>
    %cst_121 = arith.constant 0.797884583 : f32
    %251 = vector.broadcast %cst_121 : f32 to vector<8x256xf32>
    %252 = arith.mulf %251, %250 : vector<8x256xf32>
    %253 = math.tanh %252 : vector<8x256xf32>
    %cst_122 = arith.constant 1.000000e+00 : f32
    %254 = vector.broadcast %cst_122 : f32 to vector<8x256xf32>
    %255 = arith.addf %254, %253 : vector<8x256xf32>
    %256 = arith.mulf %245, %255 : vector<8x256xf32>
    %c1_123 = arith.constant 1 : index
    %c0_124 = arith.constant 0 : index
    %c0_125 = arith.constant 0 : index
    %257 = vector.load %arg13[%c1_123, %c0_124, %c0_125] : memref<2x256x128xf32, #tpu.memory_space<vmem>>, vector<1x256x128xf32>
    %258 = vector.shape_cast %257 : vector<1x256x128xf32> to vector<256x128xf32>
    %cst_126 = arith.constant dense<0.000000e+00> : vector<8x128xf32>
    %259 = tpu.matmul %256, %258, %cst_126 {dimension_numbers = #tpu.dot_dimension_numbers<[1], [0], [0], [1], [0, 0, 1, 1], [], []>} : vector<8x256xf32>, vector<256x128xf32>, vector<8x128xf32> -> vector<8x128xf32>
    %c1_127 = arith.constant 1 : index
    %c0_128 = arith.constant 0 : index
    %c0_129 = arith.constant 0 : index
    %260 = vector.load %arg14[%c1_127, %c0_128, %c0_129] : memref<2x1x128xf32, #tpu.memory_space<vmem>>, vector<1x1x128xf32>
    %261 = vector.shape_cast %260 : vector<1x1x128xf32> to vector<1x128xf32>
    %262 = vector.broadcast %261 : vector<1x128xf32> to vector<8x128xf32>
    %263 = arith.addf %259, %262 : vector<8x128xf32>
    %264 = arith.addf %263, %236 : vector<8x128xf32>
    %c1_130 = arith.constant 1 : index
    %c0_131 = arith.constant 0 : index
    %c0_132 = arith.constant 0 : index
    %265 = vector.load %arg15[%c1_130, %c0_131, %c0_132] : memref<2x1x128xf32, #tpu.memory_space<vmem>>, vector<1x1x128xf32>
    %266 = vector.shape_cast %265 : vector<1x1x128xf32> to vector<1x128xf32>
    %c1_133 = arith.constant 1 : index
    %c0_134 = arith.constant 0 : index
    %c0_135 = arith.constant 0 : index
    %267 = vector.load %arg16[%c1_133, %c0_134, %c0_135] : memref<2x1x128xf32, #tpu.memory_space<vmem>>, vector<1x1x128xf32>
    %268 = vector.shape_cast %267 : vector<1x1x128xf32> to vector<1x128xf32>
    %cst_136 = arith.constant dense<0.000000e+00> : vector<8xf32>
    %269 = vector.multi_reduction <add>, %264, %cst_136 [1] : vector<8x128xf32> to vector<8xf32>
    %270 = vector.shape_cast %269 : vector<8xf32> to vector<8x1xf32>
    %cst_137 = arith.constant 1.280000e+02 : f32
    %271 = vector.broadcast %cst_137 : f32 to vector<8x1xf32>
    %272 = arith.divf %270, %271 : vector<8x1xf32>
    %273 = vector.broadcast %272 : vector<8x1xf32> to vector<8x128xf32>
    %274 = arith.subf %264, %273 : vector<8x128xf32>
    %275 = arith.mulf %274, %274 : vector<8x128xf32>
    %cst_138 = arith.constant dense<0.000000e+00> : vector<8xf32>
    %276 = vector.multi_reduction <add>, %275, %cst_138 [1] : vector<8x128xf32> to vector<8xf32>
    %277 = vector.shape_cast %276 : vector<8xf32> to vector<8x1xf32>
    %cst_139 = arith.constant 1.280000e+02 : f32
    %278 = vector.broadcast %cst_139 : f32 to vector<8x1xf32>
    %279 = arith.divf %277, %278 : vector<8x1xf32>
    %cst_140 = arith.constant 9.99999996E-13 : f32
    %280 = vector.broadcast %cst_140 : f32 to vector<8x1xf32>
    %281 = arith.addf %279, %280 : vector<8x1xf32>
    %282 = math.rsqrt %281 : vector<8x1xf32>
    %283 = vector.broadcast %282 : vector<8x1xf32> to vector<8x128xf32>
    %284 = arith.mulf %274, %283 : vector<8x128xf32>
    %285 = vector.broadcast %266 : vector<1x128xf32> to vector<8x128xf32>
    %286 = arith.mulf %284, %285 : vector<8x128xf32>
    %287 = vector.broadcast %268 : vector<1x128xf32> to vector<8x128xf32>
    %288 = arith.addf %286, %287 : vector<8x128xf32>
    %cst_141 = arith.constant dense<0.000000e+00> : vector<128xf32>
    %289 = vector.multi_reduction <add>, %288, %cst_141 [0] : vector<8x128xf32> to vector<128xf32>
    %290 = vector.shape_cast %289 : vector<128xf32> to vector<1x128xf32>
    %cst_142 = arith.constant 8.000000e+00 : f32
    %291 = vector.broadcast %cst_142 : f32 to vector<1x128xf32>
    %292 = arith.divf %290, %291 : vector<1x128xf32>
    %293 = vector.shape_cast %292 : vector<1x128xf32> to vector<1x1x128xf32>
    %c0_143 = arith.constant 0 : index
    %c0_144 = arith.constant 0 : index
    %c0_145 = arith.constant 0 : index
    %294 = vector.load %arg17[%c0_143, %c0_144, %c0_145] : memref<1x1x128xf32, #tpu.memory_space<vmem>>, vector<1x1x128xf32>
    tpu.vector_store %arg17[%c0_143, %c0_144, %c0_145], %293 {strides = array<i32>} : memref<1x1x128xf32, #tpu.memory_space<vmem>>, vector<1x1x128xf32>,
    return
  }
  func.func @transform_0(%arg0: i32) -> (i32, i32) {
    %c0_i32 = arith.constant 0 : i32
    %c0_i32_0 = arith.constant 0 : i32
    return %arg0, %c0_i32 : i32, i32
  }
  func.func @transform_1(%arg0: i32) -> (i32, i32, i32) {
    %c0_i32 = arith.constant 0 : i32
    %c0_i32_0 = arith.constant 0 : i32
    %c0_i32_1 = arith.constant 0 : i32
    return %arg0, %c0_i32, %c0_i32_0 : i32, i32, i32
  }
  func.func @transform_2(%arg0: i32) -> (i32, i32) {
    %c0_i32 = arith.constant 0 : i32
    %c0_i32_0 = arith.constant 0 : i32
    %c0_i32_1 = arith.constant 0 : i32
    return %c0_i32, %c0_i32_0 : i32, i32
  }
  func.func @transform_3(%arg0: i32) -> (i32, i32) {
    %c0_i32 = arith.constant 0 : i32
    %c0_i32_0 = arith.constant 0 : i32
    %c0_i32_1 = arith.constant 0 : i32
    return %c0_i32, %c0_i32_0 : i32, i32
  }
  func.func @transform_4(%arg0: i32) -> (i32, i32, i32) {
    %c0_i32 = arith.constant 0 : i32
    %c0_i32_0 = arith.constant 0 : i32
    %c0_i32_1 = arith.constant 0 : i32
    %c0_i32_2 = arith.constant 0 : i32
    return %c0_i32, %c0_i32_0, %c0_i32_1 : i32, i32, i32
  }
  func.func @transform_5(%arg0: i32) -> (i32, i32, i32) {
    %c0_i32 = arith.constant 0 : i32
    %c0_i32_0 = arith.constant 0 : i32
    %c0_i32_1 = arith.constant 0 : i32
    %c0_i32_2 = arith.constant 0 : i32
    return %c0_i32, %c0_i32_0, %c0_i32_1 : i32, i32, i32
  }
  func.func @transform_6(%arg0: i32) -> (i32, i32, i32) {
    %c0_i32 = arith.constant 0 : i32
    %c0_i32_0 = arith.constant 0 : i32
    %c0_i32_1 = arith.constant 0 : i32
    %c0_i32_2 = arith.constant 0 : i32
    return %c0_i32, %c0_i32_0, %c0_i32_1 : i32, i32, i32
  }
  func.func @transform_7(%arg0: i32) -> (i32, i32, i32) {
    %c0_i32 = arith.constant 0 : i32
    %c0_i32_0 = arith.constant 0 : i32
    %c0_i32_1 = arith.constant 0 : i32
    %c0_i32_2 = arith.constant 0 : i32
    return %c0_i32, %c0_i32_0, %c0_i32_1 : i32, i32, i32
  }
  func.func @transform_8(%arg0: i32) -> (i32, i32, i32) {
    %c0_i32 = arith.constant 0 : i32
    %c0_i32_0 = arith.constant 0 : i32
    %c0_i32_1 = arith.constant 0 : i32
    %c0_i32_2 = arith.constant 0 : i32
    return %c0_i32, %c0_i32_0, %c0_i32_1 : i32, i32, i32
  }
  func.func @transform_9(%arg0: i32) -> (i32, i32, i32) {
    %c0_i32 = arith.constant 0 : i32
    %c0_i32_0 = arith.constant 0 : i32
    %c0_i32_1 = arith.constant 0 : i32
    %c0_i32_2 = arith.constant 0 : i32
    return %c0_i32, %c0_i32_0, %c0_i32_1 : i32, i32, i32
  }
  func.func @transform_10(%arg0: i32) -> (i32, i32, i32) {
    %c0_i32 = arith.constant 0 : i32
    %c0_i32_0 = arith.constant 0 : i32
    %c0_i32_1 = arith.constant 0 : i32
    %c0_i32_2 = arith.constant 0 : i32
    return %c0_i32, %c0_i32_0, %c0_i32_1 : i32, i32, i32
  }
  func.func @transform_11(%arg0: i32) -> (i32, i32, i32) {
    %c0_i32 = arith.constant 0 : i32
    %c0_i32_0 = arith.constant 0 : i32
    %c0_i32_1 = arith.constant 0 : i32
    %c0_i32_2 = arith.constant 0 : i32
    return %c0_i32, %c0_i32_0, %c0_i32_1 : i32, i32, i32
  }
  func.func @transform_12(%arg0: i32) -> (i32, i32, i32) {
    %c0_i32 = arith.constant 0 : i32
    %c0_i32_0 = arith.constant 0 : i32
    %c0_i32_1 = arith.constant 0 : i32
    %c0_i32_2 = arith.constant 0 : i32
    return %c0_i32, %c0_i32_0, %c0_i32_1 : i32, i32, i32
  }
  func.func @transform_13(%arg0: i32) -> (i32, i32, i32) {
    %c0_i32 = arith.constant 0 : i32
    %c0_i32_0 = arith.constant 0 : i32
    %c0_i32_1 = arith.constant 0 : i32
    %c0_i32_2 = arith.constant 0 : i32
    return %c0_i32, %c0_i32_0, %c0_i32_1 : i32, i32, i32
  }
  func.func @transform_14(%arg0: i32) -> (i32, i32, i32) {
    %c0_i32 = arith.constant 0 : i32
    %c0_i32_0 = arith.constant 0 : i32
    %c0_i32_1 = arith.constant 0 : i32
    %c0_i32_2 = arith.constant 0 : i32
    return %c0_i32, %c0_i32_0, %c0_i32_1 : i32, i32, i32
  }
  func.func @transform_15(%arg0: i32) -> (i32, i32, i32) {
    %c0_i32 = arith.constant 0 : i32
    %c0_i32_0 = arith.constant 0 : i32
    %c0_i32_1 = arith.constant 0 : i32
    %c0_i32_2 = arith.constant 0 : i32
    return %c0_i32, %c0_i32_0, %c0_i32_1 : i32, i32, i32
  }
  func.func @transform_16(%arg0: i32) -> (i32, i32, i32) {
    %c0_i32 = arith.constant 0 : i32
    %c0_i32_0 = arith.constant 0 : i32
    %c0_i32_1 = arith.constant 0 : i32
    return %arg0, %c0_i32, %c0_i32_0 : i32, i32, i32
  }
}

</mosaic_0001>

<bundles_post_ra>
// kernel: lang_encoder_forward.1
= control target key start
LH: loop header
LB: loop body
LE: loop exit
PB: predicated region body
PF: predicated region fallthrough
CT: control target
= control target key end

     0   :  { %s4164_s0 = inlined_call_operand.vmem [shape: f32[16,128], index: 0, kind: input, shape index: {}]   ;;  %s4165_s1 = inlined_call_operand.vmem [shape: f32[2,1,8], index: 1, kind: input, shape index: {}]   ;;  %s4166_s2 = inlined_call_operand.vmem [shape: f32[1,128], index: 2, kind: input, shape index: {}]   ;;  %s4167_s3 = inlined_call_operand.vmem [shape: f32[1,128], index: 3, kind: input, shape index: {}]   ;;  %s4168_s4 = inlined_call_operand.hbm [shape: f32[2,128,384], index: 4, kind: input, shape index: {}]   ;;  %s4169_s5 = inlined_call_operand.vmem [shape: f32[2,1,384], index: 5, kind: input, shape index: {}]   ;;  %s4170_s6 = inlined_call_operand.vmem [shape: f32[2,128,128], index: 6, kind: input, shape index: {}]   ;;  %s4171_s7 = inlined_call_operand.vmem [shape: f32[2,1,128], index: 7, kind: input, shape index: {}]   ;;  %s4172_s8 = inlined_call_operand.vmem [shape: f32[2,1,128], index: 8, kind: input, shape index: {}]   ;;  %s4173_s9 = inlined_call_operand.vmem [shape: f32[2,1,128], index: 9, kind: input, shape index: {}]   ;;  %s4174_s10 = inlined_call_operand.hbm [shape: f32[2,128,256], index: 10, kind: input, shape index: {}]   ;;  %s4175_s11 = inlined_call_operand.vmem [shape: f32[2,1,256], index: 11, kind: input, shape index: {}]   ;;  %s4176_s12 = inlined_call_operand.hbm [shape: f32[2,256,128], index: 12, kind: input, shape index: {}]   ;;  %s4177_s13 = inlined_call_operand.vmem [shape: f32[2,1,128], index: 13, kind: input, shape index: {}]   ;;  %s4178_s14 = inlined_call_operand.vmem [shape: f32[2,1,128], index: 14, kind: input, shape index: {}]   ;;  %s4179_s15 = inlined_call_operand.vmem [shape: f32[2,1,128], index: 15, kind: input, shape index: {}]   ;;  %s4180_s16 = inlined_call_operand.hbm [shape: f32[2,1,128], index: 16, kind: output, shape index: {}]  }
   0x1   :  { %4195 = sst [smem:[#allocation20_spill]] %s4164_s0 }
   0x2   :  { %4196 = sst [smem:[#allocation21_spill]] %s4174_s10 }
   0x3   :  { %4197 = sst [smem:[#allocation22_spill]] %s4179_s15 }
   0x4   :  { %4198 = sst [smem:[#allocation23_spill]] %s4180_s16 }
   0x5   :  { %21 = vsyncpa [#allocation3], 0 }
   0x6   :  { %22 = vsyncpa [#allocation6], 0 }
   0x7   :  { %23 = vsyncpa [#allocation4], 0 }
   0x8   :  { %25 = vsyncpa [#allocation4 + $0x1], 0  ;;  %s3657_s21 = smov 0   ;;  %s3659_s22 = smov 0  }
   0x9   :  { %s3661_s23 = smov 0   ;;  %s3663_s24 = smov 0  }
   0xa LB: > { %4199 = sst [smem:[#allocation12_spill]] %s3544_s21  ;;  %s3678_s25 = sadd.s32 4294967295, %s3556_s24   ;;  %s3556_s24 = sphi %s3663_s24, %s4228_s24   ;;  %s3552_s23 = sphi %s3661_s23, %s4231_s23   ;;  %s3548_s22 = sphi %s3659_s22, %s4230_s22   ;;  %s3544_s21 = sphi %s3657_s21, %s4229_s21  }
   0xb   : > { %4200 = sst [smem:[#allocation13_spill]] %s3548_s22  ;;  %s2601_s26 = sadd.s32 4294967294, %s3556_s24  }
   0xc   : > { %4201 = sst [smem:[#allocation14_spill]] %s3552_s23  ;;  %s3682_s27 = sadd.s32 1, %s3556_s24  }
   0xd   : > { %4202 = sst [smem:[#allocation15_spill]] %s3556_s24  ;;  %s384_s28 = sadd.s32 1, %s3552_s23 }
   0xe   : > { %4203 = sst [smem:[#allocation16_spill]] %s3682_s27  ;;  %s381_s29 = ssub.s32 %s3556_s24, %s3682_s27 }
   0xf   : > { %p394_p0 = scmp.ne.s32.totalorder %s3552_s23, %s3548_s22  ;;  %p382_p1 = scmp.eq.s32.totalorder %s381_s29, 0 }
  0x10   : > { %p395_p2 = scmp.eq.s32.totalorder %s3678_s25, 1  ;;  %p400_p3 = scmp.ne.s32.totalorder %s3548_s22, %s3544_s21 }
  0x11   : > { %p401_p4 = scmp.eq.s32.totalorder %s2601_s26, 1  ;;  %p2602_p7 = scmp.ge.s32.totalorder %s3556_s24, 1 }
  0x12   : > { %s3693_s30 = scalar_select %p382_p1, %s3552_s23, %s384_s28  }
  0x13   : > { %p3695_p5 = por %p395_p2, %p394_p0  ;;  %p3699_p6 = por %p401_p4, %p400_p3 }
  0x14   : > { %4204 = sst [smem:[#allocation17_spill]] %s3693_s30  ;;  %p408_p8 = scmp.lt.s32.totalorder %s3556_s24, 3 }
  0x15   : > { %s4205_s0 = scalar_select %p3695_p5, 1, 0 }
  0x16   : > { %s4207_s17 = scalar_select %p3699_p6, 1, 0 }
  0x17   : > { %4206 = sst [smem:[#allocation18_spill]] %s4205_s0  ;;  %p4187_p9 = scmp.eq.s32.totalorder %s3678_s25, 0 }
  0x18   : > { %4208 = sst [smem:[#allocation19_spill]] %s4207_s17  ;;  %p3706_p10 = pnand %p2602_p7, %p408_p8 }
  0x19   : > { %s3558_s19 = smov [#allocation5]   ;;  %s3559_s28 = smov [#allocation2]  }
  0x1a   : > { %s4209_s18 = scalar_select %p3706_p10, 1, 0 }
  0x1b   : > { %s454_s20 = sshll.u32 %s3558_s19, 4  ;;  %p3302_p11 = pneg %p3706_p10  ;;  %s455_s20 = int_to_ptr.vmem [resolvable:$true] %s454_s20 }
  0x1c   : > { %s426_s29 = sshll.u32 %s3559_s28, 4  ;;  %s4211_s10 = sld [smem:[#allocation21_spill]]  ;;  %s3718_s29 = int_to_ptr.vmem [resolvable:$true] %s426_s29 }
  0x1d   : > { %p3714_p12 = pnand %p4187_p9, %p3302_p11 }
  0x1f   : > { %p3728_p0 = pneg %p3714_p12 }
  0x22   : > { %s3402_s27 = scalar_lea.hbm %s4211_s10, 8192 }
  0x23   : > { %p3403_p13 = scmp.ne.s32.totalorder %s4211_s10, %s3402_s27  ;;  %p3409_p3 = scmp.lt.u32.totalorder %s3402_s27, %s4211_s10 }
  0x25   : > { %p3405_p1 = pnand %p3728_p0, %p3403_p13 }
  0x27   : > { %p3406_p2 = pneg %p3405_p1 }
  0x29   : > { %p3411_p4 = pnand %p3409_p3, %p3406_p2 }
  0x2b   : > { %3414 = shalt.err (!%p3411_p4)
}
  0x2c   : > { %s3415_s23 = scalar_lea.vmem %s455_s20, 8192  ;;  %p3423_p9 = scmp.lt.s32.totalorder %s455_s20, %s455_s20 }
  0x2d   : > { %p3416_p7 = scmp.ne.s32.totalorder %s455_s20, %s3415_s23  ;;  %p3424_p6 = scmp.lt.s32.totalorder %s3415_s23, %s3415_s23 }
  0x2f   : > { %p3418_p8 = pnand %p3416_p7, %p3728_p0  ;;  %p3425_p5 = por %p3424_p6, %p3423_p9 }
  0x31   : > { %p3419_p11 = pneg %p3418_p8 }
  0x33   : > { %p3426_p10 = pnand %p3425_p5, %p3419_p11 }
  0x35   : > { %3429 = shalt.err (!%p3426_p10)
}
  0x36   : > { %s3560_s21 = smov 256   ;;  %s3561_s30 = smov 16  }
  0x37   : > { %3308 = dma.hbm_to_vmem [thread:$0]  (!%p3714_p12), %s4211_s10, 8192, %s455_s20, [#allocation6], %s3560_s21, %s3560_s21, %s3561_s30  }
  0x38   : > { %s3430_s16 = scalar_lea.hbm %s4168_s4, 12288 }
  0x39   : > { %p3431_p13 = scmp.ne.s32.totalorder %s4168_s4, %s3430_s16  ;;  %p3437_p9 = scmp.lt.u32.totalorder %s3430_s16, %s4168_s4 }
  0x3b   : > { %p3433_p5 = pnand %p3431_p13, %p3728_p0 }
  0x3d   : > { %p3434_p6 = pneg %p3433_p5 }
  0x3f   : > { %p3439_p10 = pnand %p3437_p9, %p3434_p6 }
  0x41   : > { %3442 = shalt.err (!%p3439_p10)
}
  0x42   : > { %s3443_s20 = scalar_lea.vmem %s3718_s29, 12288  ;;  %p3451_p4 = scmp.lt.s32.totalorder %s3718_s29, %s3718_s29 }
  0x43   : > { %p3444_p1 = scmp.ne.s32.totalorder %s3718_s29, %s3443_s20  ;;  %p3452_p7 = scmp.lt.s32.totalorder %s3443_s20, %s3443_s20 }
  0x45   : > { %p3446_p2 = pnand %p3444_p1, %p3728_p0  ;;  %p3453_p8 = por %p3452_p7, %p3451_p4 }
  0x47   : > { %p3447_p3 = pneg %p3446_p2 }
  0x49   : > { %p3454_p11 = pnand %p3453_p8, %p3447_p3 }
  0x4b   : > { %3457 = shalt.err (!%p3454_p11)
}
  0x4c   : > { %s3562_s22 = smov 384   ;;  %s3563_s15 = smov 24  }
  0x4d   : > { %3305 = dma.hbm_to_vmem [thread:$0]  (!%p3714_p12), %s4168_s4, 12288, %s3718_s29, [#allocation3], %s3562_s22, %s3562_s22, %s3563_s15  }
  0x4e   : > { %s3564_s21 = smov [#allocation7]   ;;  %s3458_s17 = scalar_lea.hbm %s4176_s12, 8192 }
  0x4f   : > { %s470_s30 = sshll.u32 %s3564_s21, 4  ;;  %p3459_p13 = scmp.ne.s32.totalorder %s4176_s12, %s3458_s17  ;;  %s471_s30 = int_to_ptr.vmem [resolvable:$true] %s470_s30 }
  0x50   : > { %p3465_p9 = scmp.lt.u32.totalorder %s3458_s17, %s4176_s12 }
  0x51   : > { %p3461_p5 = pnand %p3459_p13, %p3728_p0 }
  0x53   : > { %p3462_p6 = pneg %p3461_p5 }
  0x55   : > { %p3467_p10 = pnand %p3465_p9, %p3462_p6 }
  0x57   : > { %3470 = shalt.err (!%p3467_p10)
}
  0x58   : > { %s3471_s29 = scalar_lea.vmem %s471_s30, 8192  ;;  %p3479_p4 = scmp.lt.s32.totalorder %s471_s30, %s471_s30 }
  0x59   : > { %p3472_p1 = scmp.ne.s32.totalorder %s471_s30, %s3471_s29  ;;  %p3480_p7 = scmp.lt.s32.totalorder %s3471_s29, %s3471_s29 }
  0x5b   : > { %p3474_p2 = pnand %p3472_p1, %p3728_p0  ;;  %p3481_p8 = por %p3480_p7, %p3479_p4 }
  0x5d   : > { %p3475_p3 = pneg %p3474_p2 }
  0x5f   : > { %p3482_p11 = pnand %p3481_p8, %p3475_p3 }
  0x61   : > { %3485 = shalt.err (!%p3482_p11)
}
  0x62   : > { %s3565_s22 = smov 128   ;;  %s3566_s15 = smov 8  }
  0x63   : > { %3311 = dma.hbm_to_vmem [thread:$0]  (!%p3714_p12), %s4176_s12, 8192, %s471_s30, [#allocation6], %s3565_s22, %s3565_s22, %s3566_s15  }
  0x64   : > { %p4213_p13 = scmp.ne.s32.totalorder %s4209_s18, 0 }
  0x65   : > { %p4214_p5 = scmp.eq.s32.totalorder (!%p4213_p13), %s3678_s25, 0 }
  0x66   : > { %508 = sbr.rel (%p4213_p13) target bundleno = 6269 (0x187d), region = 84 }
  0x6d   : > { %3531 = dma.done.wait (%p4214_p5), [#allocation3], 12288   ;;  %p4215_p0 = pmov %p4214_p5 }
  0x6f   : > { %3533 = vsyncadd (%p4215_p0), [#allocation3], 4294955008  ;;  %p4216_p6 = pmov %p4215_p0 }
  0x70   : > { %p4217_p9 = pmov %p4215_p0 }
  0x71   : > { %3535 = dma.done.wait (%p4216_p6), [#allocation6], 16384  }
  0x72   : > { %3537 = vsyncadd (%p4217_p9), [#allocation6], 4294950912  ;;  %p567_p10 = scmp.lt.s32.totalorder %s3678_s25, 1  ;;  %s4218_s21 = sld [smem:[#allocation20_spill]]  ;;  %v607_v1 = vld [vmem:[#allocation2 + $0x8] sm:$0xff]  ;;  %v610_v2 = vld [vmem:[#allocation2 + $0x20] sm:$0xff] }
  0x73   : > { %v606_v3 = vld [vmem:[#allocation2] sm:$0xff]  ;;  %v3000_v4 = vpack.c.bf16 %v610_v2, %v607_v1  ;;  %v3567_v5 = vmov 0.0|0.0   ;;  %v609_v6 = vld [vmem:[#allocation2 + $0x18] sm:$0xff]  ;;  %v608_v7 = vld [vmem:[#allocation2 + $0x10] sm:$0xff]  ;;  %v3568_v57 = vmov 0.0   ;;  %vm3569_vm0 = vmmov 0  }
  0x74   : > { %s3797_s26 = scalar_select %p567_p10, %s3678_s25, 1  ;;  %3032 = vmatprep.subr.bf16.mxu1 %v3567_v5  ;;  %v611_v8 = vld [vmem:[#allocation2 + $0x28] sm:$0xff]  ;;  %v3002_v9 = vpack.c.bf16 %v609_v6, %v606_v3  ;;  %v613_v11 = vld [vmem:[#allocation2 + $0x38] sm:$0xff]  ;;  %v616_v12 = vld [vmem:[#allocation2 + $0x50] sm:$0xff]  ;;  %735 = vmatprep.mubr.f32.mxu0 %v3568_v57  ;;  %vm819_vm1 = vcmask 523264   ;;  %vm896_vm2 = vcmask 64512  }
  0x75   : > { %v3033_v10 = vpack.c.bf16 %v611_v8, %v608_v7  ;;  %v612_v13 = vld [vmem:[#allocation2 + $0x30] sm:$0xff]  ;;  %3001 = vmatprep.subr.bf16.mxu0 %v3000_v4  ;;  %v3004_v14 = vpack.c.bf16 %v616_v12, %v613_v11  ;;  %v615_v15 = vld [vmem:[#allocation2 + $0x48] sm:$0xff]  ;;  %v614_v16 = vld [vmem:[#allocation2 + $0x40] sm:$0xff]  ;;  %2852 = vmatprep.mubr.msk.f32.mxu1 %vm3569_vm0, %v3568_v57  ;;  %s3570_s29 = smov 64   ;;  %s4219_s15 = sld [smem:[#allocation22_spill]] }
  0x76   : > { %s2611_s18 = sshll.u32 %s3797_s26, 3  ;;  %v617_v17 = vld [vmem:[#allocation2 + $0x58] sm:$0xff]  ;;  %3003 = vmatpush1.bf16.msra.mxu0 %v3002_v9  ;;  %v3006_v18 = vpack.c.bf16 %v615_v15, %v612_v13  ;;  %v619_v20 = vld [vmem:[#allocation2 + $0x68] sm:$0xff]  ;;  %v622_v21 = vld [vmem:[#allocation2 + $0x80] sm:$0xff]  ;;  %s573_s16 = scalar_lea.vmem %s4165_s1, %s3797_s26 }
  0x77   : > { %3034 = vmatpush3.bf16.msra.mxu1 %v3033_v10  ;;  %v3036_v19 = vpack.c.bf16 %v617_v17, %v614_v16  ;;  %v618_v22 = vld [vmem:[#allocation2 + $0x60] sm:$0xff]  ;;  %3005 = vmatprep.subr.bf16.mxu0 %v3004_v14  ;;  %v3008_v23 = vpack.c.bf16 %v622_v21, %v619_v20  ;;  %v621_v24 = vld [vmem:[#allocation2 + $0x78] sm:$0xff]  ;;  %v620_v25 = vld [vmem:[#allocation2 + $0x70] sm:$0xff]  ;;  %s4220_s20 = sld [smem:[#allocation13_spill]]  ;;  %s2663_s0 = sshll.u32 %s3678_s25, 4 }
  0x78   : > { %s570_s30 = scalar_lea.vmem %s4218_s21, %s2611_s18  ;;  %3035 = vmatprep.subr.bf16.mxu1 %v3567_v5  ;;  %v623_v26 = vld [vmem:[#allocation2 + $0x88] sm:$0xff]  ;;  %v3010_v27 = vpack.c.bf16 %v621_v24, %v618_v22  ;;  %v625_v33 = vld [vmem:[#allocation2 + $0x98] sm:$0xff]  ;;  %v628_v34 = vld [vmem:[#allocation2 + $0xb0] sm:$0xff]  ;;  %s4221_s18 = sld [smem:[#allocation18_spill]] }
  0x79   : > { %v574_v0 = vld [vmem:[%s570_s30] sm:$0xff]  ;;  %v3039_v28 = vpack.c.bf16 %v623_v26, %v620_v25  ;;  %v3012_v35 = vpack.c.bf16 %v628_v34, %v625_v33  ;;  %v624_v36 = vld [vmem:[#allocation2 + $0x90] sm:$0xff]  ;;  %v627_v37 = vld [vmem:[#allocation2 + $0xa8] sm:$0xff]  ;;  %v656_v25 = vlaneseq  ;;  %s4222_s27 = sld [smem:[#allocation23_spill]]  ;;  %s3571_s25 = smov [#allocation8]  }
  0x7a   : > { %577 = vadd.xlane.f32.xlu0 %v574_v0  ;;  %3007 = vmatpush1.bf16.msra.mxu0 %v3006_v18  ;;  %v626_v38 = vld [vmem:[#allocation2 + $0xa0] sm:$0xff]  ;;  %v3014_v39 = vpack.c.bf16 %v627_v37, %v624_v36  ;;  %v629_v40 = vld [vmem:[#allocation2 + $0xb8] sm:$0xff]  ;;  %v631_v42 = vld [vmem:[#allocation2 + $0xc8] sm:$0xff] }
  0x7b   : > { %3037 = vmatpush3.bf16.msra.mxu1 %v3036_v19  ;;  %3009 = vmatprep.subr.bf16.mxu0 %v3008_v23  ;;  %v3042_v41 = vpack.c.bf16 %v629_v40, %v626_v38  ;;  %v634_v43 = vld [vmem:[#allocation2 + $0xe0] sm:$0xff]  ;;  %v633_v46 = vld [vmem:[#allocation2 + $0xd8] sm:$0xff]  ;;  %v632_v47 = vld [vmem:[#allocation2 + $0xd0] sm:$0xff]  ;;  %v3833_v26 = vshrl.u32 %v656_v25, 7 }
  0x7c   : > { %3038 = vmatprep.subr.bf16.mxu1 %v3567_v5  ;;  %v3016_v44 = vpack.c.bf16 %v634_v43, %v631_v42  ;;  %v630_v45 = vld [vmem:[#allocation2 + $0xc0] sm:$0xff]  ;;  %v635_v49 = vld [vmem:[#allocation2 + $0xe8] sm:$0xff]  ;;  %v637_v50 = vld [vmem:[#allocation2 + $0xf8] sm:$0xff] }
  0x7d   : > { %v3018_v48 = vpack.c.bf16 %v633_v46, %v630_v45  ;;  %v640_v51 = vld [vmem:[#allocation2 + $0x110] sm:$0xff]  ;;  %v3045_v52 = vpack.c.bf16 %v635_v49, %v632_v47  ;;  %v639_v55 = vld [vmem:[#allocation2 + $0x108] sm:$0xff]  ;;  %v638_v56 = vld [vmem:[#allocation2 + $0x100] sm:$0xff]  ;;  %s565_s19 = sand.u32 1, %s4220_s20   ;;  %s3490_s20 = sshll.u32 %s3571_s25, 4  ;;  %s3491_s20 = int_to_ptr.vmem [resolvable:$false] %s3490_s20 }
  0x7e   : > { %3011 = vmatpush1.bf16.msra.mxu0 %v3010_v27  ;;  %v3020_v53 = vpack.c.bf16 %v640_v51, %v637_v50  ;;  %v636_v54 = vld [vmem:[#allocation2 + $0xf0] sm:$0xff]  ;;  %v641_v59 = vld [vmem:[#allocation2 + $0x118] sm:$0xff]  ;;  %v643_v60 = vld [vmem:[#allocation2 + $0x128] sm:$0xff]  ;;  %v3836_v27 = vsub.s32 0, %v3833_v26  ;;  %s2494_s28 = scalar_lea.sflag [#allocation4], %s565_s19  ;;  %p4223_p1 = scmp.ne.s32.totalorder %s4221_s18, 0 }
  0x7f   : > { %3040 = vmatpush3.bf16.msra.mxu1 %v3039_v28  ;;  %3013 = vmatprep.subr.bf16.mxu0 %v3012_v35  ;;  %v3022_v58 = vpack.c.bf16 %v639_v55, %v636_v54  ;;  %v646_v61 = vld [vmem:[#allocation2 + $0x140] sm:$0xff]  ;;  %v3048_v62 = vpack.c.bf16 %v641_v59, %v638_v56  ;;  %v645_v1 = vld [vmem:[#allocation2 + $0x138] sm:$0xff]  ;;  %v644_v2 = vld [vmem:[#allocation2 + $0x130] sm:$0xff]  ;;  %s4122_s17 = scalar_lea.hbm %s4222_s27, %s2663_s0  ;;  %s3492_s22 = scalar_lea.vmem %s3491_s20, 32 }
  0x80   : > { %3041 = vmatprep.subr.bf16.mxu1 %v3567_v5  ;;  %v3024_v63 = vpack.c.bf16 %v646_v61, %v643_v60  ;;  %v647_v3 = vld [vmem:[#allocation2 + $0x148] sm:$0xff]  ;;  %v649_v4 = vld [vmem:[#allocation2 + $0x158] sm:$0xff]  ;;  %v652_v6 = vld [vmem:[#allocation2 + $0x170] sm:$0xff] }
  0x81   : > { %v3051_v8 = vpack.c.bf16 %v647_v3, %v644_v2  ;;  %v3028_v9 = vpack.c.bf16 %v652_v6, %v649_v4  ;;  %v648_v10 = vld [vmem:[#allocation2 + $0x150] sm:$0xff]  ;;  %v651_v11 = vld [vmem:[#allocation2 + $0x168] sm:$0xff]  ;;  %v650_v12 = vld [vmem:[#allocation2 + $0x160] sm:$0xff] }
  0x82   : > { %3015 = vmatpush1.bf16.msra.mxu0 %v3014_v39  ;;  %v653_v13 = vld [vmem:[#allocation2 + $0x178] sm:$0xff]  ;;  %v3030_v14 = vpack.c.bf16 %v651_v11, %v648_v10  ;;  %v2612_v20 = vld [vmem:[%s4166_s2] ss:$0 sm:$0xff] }
  0x83   : > { %3043 = vmatpush3.bf16.msra.mxu1 %v3042_v41  ;;  %3017 = vmatprep.subr.bf16.mxu0 %v3016_v44  ;;  %v3054_v15 = vpack.c.bf16 %v653_v13, %v650_v12  ;;  %v2613_v22 = vld [vmem:[%s4167_s3] ss:$0 sm:$0xff] }
  0x84   : > { %3044 = vmatprep.subr.bf16.mxu1 %v3567_v5  ;;  %v654_v28 = vld [vmem:[%s4169_s5] sm:$0x7] }
  0x85   : > { %v603_v42 = vld [vmem:[%s573_s16] sm:$0x1] }
  0x86   : > { %3019 = vmatpush1.bf16.msra.mxu0 %v3018_v48  ;;  %v2614_v43 = vadd.f32 -1.0, %v603_v42  ;;  %v1152_v13 = vld [vmem:[%s4170_s6] sm:$0xff] }
  0x87   : > { %3046 = vmatpush3.bf16.msra.mxu1 %v3045_v52  ;;  %3021 = vmatprep.subr.bf16.mxu0 %v3020_v53 }
  0x88   : > { %3047 = vmatprep.subr.bf16.mxu1 %v3567_v5  ;;  %v605_v44 = vmul.f32 1e+09, %v2614_v43 }
  0x8a   : > { %3023 = vmatpush1.bf16.msra.mxu0 %v3022_v58  ;;  %v3861_v45 = vrot.slane %v605_v44, %v3836_v27 }
  0x8b   : > { %3049 = vmatpush3.bf16.msra.mxu1 %v3048_v62  ;;  %3025 = vmatprep.subr.bf16.mxu0 %v3024_v63 }
  0x8c   : > { %3050 = vmatprep.subr.bf16.mxu1 %v3567_v5 }
  0x8f   : > { %3052 = vmatpush3.bf16.msra.mxu1 %v3051_v8 }
  0x90   : > { %3053 = vmatprep.subr.bf16.mxu1 %v3567_v5 }
  0x93   : > { %3055 = vmatpush3.bf16.msra.mxu1 %v3054_v15  ;;  %v1154_v15 = vld [vmem:[%s4170_s6 + $0x10] sm:$0xff] }
 0x107   : > { %v578_v29 = vpop.xlane.xlu0 %577 }
 0x108   : > { %v580_v30 = vmul.f32 0.0078125, %v578_v29  ;;  %v3842_v29 = vsub.s32 1, %v3833_v26 }
 0x10a   : > { %v3807_v31 = vsub.f32 %v574_v0, %v580_v30  ;;  %v642_v0 = vld [vmem:[#allocation2 + $0x120] sm:$0xff]  ;;  %v659_v30 = vrot.slane %v654_v28, %v3836_v27 }
 0x10b   : > { %v3026_v7 = vpack.c.bf16 %v645_v1, %v642_v0 }
 0x10c   : > { %v582_v32 = vmul.f32 %v3807_v31, %v3807_v31 }
 0x10d   : > { %3027 = vmatpush1.bf16.msra.mxu0 %v3026_v7 }
 0x10e   : > { %583 = vadd.xlane.f32.xlu0 %v582_v32  ;;  %3029 = vmatprep.subr.bf16.mxu0 %v3028_v9  ;;  %v663_v32 = vrot.slane %v654_v28, %v3842_v29 }
 0x111   : > { %3031 = vmatpush1.bf16.msra.mxu0 %v3030_v14  ;;  %v1153_v14 = vld [vmem:[%s4170_s6 + $0x8] sm:$0xff] }
 0x112   : > { %2855 = vmatprep.subr.mxu0 %v3568_v57 }
 0x19b   : > { %v584_v16 = vpop.xlane.xlu0 %583 }
 0x19c   : > { %v585_v17 = vmul.f32 0.0078125, %v584_v16  ;;  %v3057_v16 = vpack.c.bf16 %v1153_v14, %v1152_v13  ;;  %v1285_v14 = vld [vmem:[#allocation5 + $0x60] sm:$0xff] }
 0x19e   : > { %v586_v18 = vadd.f32 1e-12, %v585_v17  ;;  %v1155_v17 = vld [vmem:[%s4170_s6 + $0x18] sm:$0xff] }
 0x1a0   : > { %3368 = vrsqrt.f32 %v586_v18  ;;  %v3060_v18 = vpack.c.bf16 %v1155_v17, %v1154_v15  ;;  %v1287_v15 = vld [vmem:[#allocation5 + $0x70] sm:$0xff]  ;;  %v1290_v17 = vld [vmem:[#allocation5 + $0x88] sm:$0xff] }
 0x1aa   : > { %v3369_v19 = vpop.eup %3368 }
 0x1ab   : > { %v588_v21 = vmul.f32 %v3369_v19, %v3807_v31  ;;  %v666_v31 = vsub.s32 2, %v3833_v26  ;;  %v1156_v19 = vld [vmem:[%s4170_s6 + $0x20] sm:$0xff] }
 0x1ad   : > { %v595_v23 = vmul.f32 %v2612_v20, %v588_v21  ;;  %v667_v38 = vrot.slane %v654_v28, %v666_v31  ;;  %v1157_v20 = vld [vmem:[%s4170_s6 + $0x28] sm:$0xff]  ;;  %v1160_v28 = vld [vmem:[%s4170_s6 + $0x40] sm:$0xff] }
 0x1ae   : > { %v3063_v21 = vpack.c.bf16 %v1157_v20, %v1156_v19  ;;  %v1289_v20 = vld [vmem:[#allocation5 + $0x80] sm:$0xff] }
 0x1af   : > { %v3826_v24 = vadd.f32 %v2613_v22, %v595_v23  ;;  %v1158_v22 = vld [vmem:[%s4170_s6 + $0x30] sm:$0xff]  ;;  %v1159_v23 = vld [vmem:[%s4170_s6 + $0x38] sm:$0xff] }
 0x1b0   : > { %v3066_v25 = vpack.c.bf16 %v1159_v23, %v1158_v22  ;;  %v1294_v22 = vld [vmem:[#allocation5 + $0xa8] sm:$0xff] }
 0x1b1   : > { %736 = vmatmul.mubr.f32.vlgmr.msra.gmra.mrb[0].mxu0 %v3826_v24  ;;  %2853 = vmatmul.mubr.f32.vlgmr.msra.gmra.mrb[0].mxu1 %v3826_v24 }
 0x1b2   : > { %2857 = vmatprep.mubr.msk.f32.mxu0 %vm3569_vm0, %v3568_v57  ;;  %1381 = vmatprep.mubr.f32.mxu1 %v3568_v57 }
 0x284   : > { %v737_v33 = vpop.f32.mrb[0].mxu0  ;;  %v808_v34 = vpop.f32.mrb[0].mxu1 }
 0x285   : > { %v738_v35 = vadd.f32 %v737_v33, %v659_v30  ;;  %v739_v36 = vpop.f32.mrb[1].mxu0  ;;  %v2854_v37 = vpop.f32.mrb[1].mxu1  ;;  %v809_v41 = vadd.f32 %v808_v34, %v667_v38  ;;  %v1161_v30 = vld [vmem:[%s4170_s6 + $0x48] sm:$0xff]  ;;  %v1162_v33 = vld [vmem:[%s4170_s6 + $0x50] sm:$0xff]  ;;  %v1163_v34 = vld [vmem:[%s4170_s6 + $0x58] sm:$0xff] }
 0x286   : > { %v740_v39 = vadd.f32 %v739_v36, %v663_v32  ;;  %v3069_v32 = vpack.c.bf16 %v1161_v30, %v1160_v28  ;;  %v1164_v36 = vld [vmem:[%s4170_s6 + $0x60] sm:$0xff]  ;;  %v1165_v37 = vld [vmem:[%s4170_s6 + $0x68] sm:$0xff]  ;;  %v1295_v30 = vld [vmem:[#allocation5 + $0xb0] sm:$0xff] }
 0x287   : > { %v812_v40 = vmul.f32 0.125, %v738_v35  ;;  %v3072_v35 = vpack.c.bf16 %v1163_v34, %v1162_v33  ;;  %v3075_v38 = vpack.c.bf16 %v1165_v37, %v1164_v36  ;;  %v1293_v28 = vld [vmem:[#allocation5 + $0xa0] sm:$0xff]  ;;  %v1298_v33 = vld [vmem:[#allocation5 + $0xc8] sm:$0xff]  ;;  %v1300_v34 = vld [vmem:[#allocation5 + $0xd8] sm:$0xff] }
 0x288   : > { %983 = vrot.lane.b32.xlu0 %v740_v39, %s3570_s29  ;;  %2856 = vmatpush3.xpose.msk.msra.mxu0 %vm819_vm1, %v740_v39  ;;  %v1166_v39 = vld [vmem:[%s4170_s6 + $0x70] sm:$0xff]  ;;  %v3104_v36 = vpack.c.bf16 %v1300_v34, %v1298_v33  ;;  %v1297_v37 = vld [vmem:[#allocation5 + $0xc0] sm:$0xff]  ;;  %v1435_v34 = vld [vmem:[#allocation7 + $0xe8] sm:$0xff] }
 0x289   : > { %2860 = vmatprep.subr.mxu0 %v3568_v57  ;;  %v1434_v33 = vld [vmem:[#allocation7 + $0xe0] sm:$0xff] }
 0x28b   : > { %2858 = vmatmul.mubr.msk.f32.vlgmr.msra.gmra.mrb[2].mxu0 %vm819_vm1, %v812_v40 }
 0x28c   : > { %2861 = vmatpush3.msra.mxu0 %v809_v41  ;;  %2862 = vmatprep.mubr.msk.f32.mxu0 %vm3569_vm0, %v3568_v57 }
 0x28d   : > { %2865 = vmatprep.subr.mxu0 %v3568_v57 }
 0x2fa   : > { %v984_v59 = vpop.permute.xlu0 %983 }
 0x35e   : > { %v892_v46 = vpop.f32.mrb[2].mxu0 }
 0x35f   : > { %v893_v47 = vadd.f32 %v892_v46, %v3861_v45  ;;  %v2859_v48 = vpop.f32.mrb[3].mxu0 }
 0x361   : > { %v897_v49 = vsel %vm896_vm2, %v893_v47, -inf }
 0x362   : > { %898 = vmax.xlane.f32.xlu1 %v897_v49 }
 0x3ef   : > { %v899_v50 = vpop.xlane.xlu1 %898 }
 0x3f0   : > { %v900_v51 = vsub.f32 %v893_v47, %v899_v50  ;;  %v2621_v47 = vld [vmem:[%s4171_s7] ss:$0 sm:$0xff] }
 0x3f2   : > { %v901_v52 = vmul.f32 1.442695, %v900_v51 }
 0x3f4   : > { %3370 = vpow2.f32 %v901_v52  ;;  %v1274_v52 = vld [vmem:[#allocation5 + $0x8] sm:$0xff] }
 0x3fe   : > { %v3371_v53 = vpop.eup %3370 }
 0x3ff   : > { %v903_v54 = vsel %vm896_vm2, %v3371_v53, 0.0 }
 0x400   : > { %904 = vadd.xlane.f32.xlu1 %v903_v54  ;;  %v1273_v54 = vld [vmem:[#allocation5] sm:$0xff] }
 0x411   : > { %981 = vrot.lane.b32.xlu1 %v812_v40, %s3570_s29  ;;  %v1167_v40 = vld [vmem:[%s4170_s6 + $0x78] sm:$0xff] }
 0x48d   : > { %v905_v55 = vpop.xlane.xlu1 %904 }
 0x48e   : > { %3372 = vrcp.f32 %v905_v55 }
 0x491   : > { %v982_v60 = vpop.permute.xlu1 %981 }
 0x498   : > { %v3373_v56 = vpop.eup %3372 }
 0x499   : > { %v907_v58 = vmul.f32 %v3373_v56, %v3371_v53  ;;  %v1276_v53 = vld [vmem:[#allocation5 + $0x18] sm:$0xff]  ;;  %v1275_v56 = vld [vmem:[#allocation5 + $0x10] sm:$0xff] }
 0x49a   : > { %v3080_v55 = vpack.c.bf16 %v1276_v53, %v1274_v52 }
 0x49b   : > { %2863 = vmatmul.mubr.msk.f32.vlgmr.msra.gmra.mrb[4].mxu0 %vm896_vm2, %v907_v58  ;;  %v1278_v58 = vld [vmem:[#allocation5 + $0x28] sm:$0xff] }
 0x49c   : > { %2866 = vmatpush3.xpose.msk.msra.mxu0 %vm819_vm1, %v984_v59  ;;  %2867 = vmatprep.mubr.msk.f32.mxu0 %vm3569_vm0, %v3568_v57  ;;  %v1280_v59 = vld [vmem:[#allocation5 + $0x38] sm:$0xff] }
 0x49d   : > { %2870 = vmatprep.subr.mxu0 %v3568_v57  ;;  %3081 = vmatprep.subr.bf16.mxu1 %v3080_v55 }
 0x49f   : > { %2868 = vmatmul.mubr.msk.f32.vlgmr.msra.gmra.mrb[6].mxu0 %vm819_vm1, %v982_v60  ;;  %v3082_v60 = vpack.c.bf16 %v1275_v56, %v1273_v54 }
 0x4a0   : > { %2872 = vmatprep.mubr.msk.f32.mxu0 %vm3569_vm0, %v3568_v57 }
 0x4a1   : > { %3083 = vmatpush1.bf16.msra.mxu1 %v3082_v60  ;;  %v2623_v60 = vld [vmem:[%s4173_s9] ss:$0 sm:$0xff] }
 0x56e   : > { %v3875_v61 = vpop.f32.mrb[4].mxu0 }
 0x56f   : > { %v2864_v62 = vpop.f32.mrb[5].mxu0 }
 0x570   : > { %v1277_v62 = vld [vmem:[#allocation5 + $0x20] sm:$0xff] }
 0x572   : > { %v1055_v63 = vpop.f32.mrb[6].mxu0 }
 0x573   : > { %v1056_v0 = vadd.f32 %v1055_v63, %v3861_v45  ;;  %v2869_v1 = vpop.f32.mrb[7].mxu0  ;;  %v1279_v63 = vld [vmem:[#allocation5 + $0x30] sm:$0xff] }
 0x574   : > { %v1284_v1 = vld [vmem:[#allocation5 + $0x58] sm:$0xff] }
 0x575   : > { %v1059_v2 = vsel %vm896_vm2, %v1056_v0, -inf }
 0x576   : > { %1060 = vmax.xlane.f32.xlu1 %v1059_v2  ;;  %v3086_v2 = vpack.c.bf16 %v1279_v63, %v1277_v62  ;;  %v1424_v63 = vld [vmem:[#allocation7 + $0x90] sm:$0xff] }
 0x603   : > { %v1061_v3 = vpop.xlane.xlu1 %1060 }
 0x604   : > { %v1062_v4 = vsub.f32 %v1056_v0, %v1061_v3  ;;  %v1282_v0 = vld [vmem:[#allocation5 + $0x48] sm:$0xff] }
 0x605   : > { %v3088_v3 = vpack.c.bf16 %v1284_v1, %v1282_v0  ;;  %v1425_v0 = vld [vmem:[#allocation7 + $0x98] sm:$0xff] }
 0x606   : > { %v1063_v6 = vmul.f32 1.442695, %v1062_v4  ;;  %v1283_v4 = vld [vmem:[#allocation5 + $0x50] sm:$0xff]  ;;  %v3116_v1 = vpack.c.bf16 %v1425_v0, %v1424_v63 }
 0x608   : > { %3374 = vpow2.f32 %v1063_v6 }
 0x612   : > { %v3375_v7 = vpop.eup %3374 }
 0x613   : > { %v1065_v8 = vsel %vm896_vm2, %v3375_v7, 0.0 }
 0x614   : > { %1066 = vadd.xlane.f32.xlu0 %v1065_v8 }
 0x62a   : > { %1071 = vrot.lane.b32.xlu0 %v809_v41, %s3570_s29  ;;  %v3078_v41 = vpack.c.bf16 %v1167_v40, %v1166_v39  ;;  %v1302_v39 = vld [vmem:[#allocation5 + $0xe8] sm:$0xff]  ;;  %v1304_v40 = vld [vmem:[#allocation5 + $0xf8] sm:$0xff] }
 0x6a1   : > { %v1067_v9 = vpop.xlane.xlu0 %1066 }
 0x6a2   : > { %3376 = vrcp.f32 %v1067_v9 }
 0x6a5   : > { %v1072_v10 = vpop.permute.xlu0 %1071 }
 0x6a6   : > { %2871 = vmatpush3.msra.mxu0 %v1072_v10 }
 0x6a7   : > { %3056 = vmatprep.subr.bf16.mxu0 %v3567_v5 }
 0x6ac   : > { %v3377_v11 = vpop.eup %3376 }
 0x6ad   : > { %v1069_v12 = vmul.f32 %v3377_v11, %v3375_v7  ;;  %v1286_v11 = vld [vmem:[#allocation5 + $0x68] sm:$0xff] }
 0x6af   : > { %2873 = vmatmul.mubr.msk.f32.vlgmr.msra.gmra.mrb[8].mxu0 %vm896_vm2, %v1069_v12  ;;  %v1288_v12 = vld [vmem:[#allocation5 + $0x78] sm:$0xff] }
 0x6b0   : > { %2907 = vmatprep.mubr.msk.f32.mxu0 %vm3569_vm0, %v3568_v57  ;;  %3058 = vmatpush3.bf16.msra.mxu0 %v3057_v16  ;;  %v3092_v13 = vpack.c.bf16 %v1288_v12, %v1286_v11  ;;  %v3094_v16 = vpack.c.bf16 %v1287_v15, %v1285_v14  ;;  %v1428_v11 = vld [vmem:[#allocation7 + $0xb0] sm:$0xff]  ;;  %v1429_v12 = vld [vmem:[#allocation7 + $0xb8] sm:$0xff] }
 0x6b1   : > { %3059 = vmatprep.subr.bf16.mxu0 %v3567_v5  ;;  %v1412_v14 = vld [vmem:[#allocation7 + $0x30] sm:$0xff]  ;;  %v1413_v15 = vld [vmem:[#allocation7 + $0x38] sm:$0xff] }
 0x6b4   : > { %3061 = vmatpush3.bf16.msra.mxu0 %v3060_v18  ;;  %v1292_v18 = vld [vmem:[#allocation5 + $0x98] sm:$0xff] }
 0x6b5   : > { %3062 = vmatprep.subr.bf16.mxu0 %v3567_v5  ;;  %v3096_v19 = vpack.c.bf16 %v1292_v18, %v1290_v17  ;;  %v3126_v17 = vpack.c.bf16 %v1413_v15, %v1412_v14  ;;  %v1431_v18 = vld [vmem:[#allocation7 + $0xc8] sm:$0xff] }
 0x6b8   : > { %3064 = vmatpush3.bf16.msra.mxu0 %v3063_v21  ;;  %v1291_v21 = vld [vmem:[#allocation5 + $0x90] sm:$0xff] }
 0x6b9   : > { %3065 = vmatprep.subr.bf16.mxu0 %v3567_v5  ;;  %v3098_v23 = vpack.c.bf16 %v1291_v21, %v1289_v20  ;;  %v1415_v20 = vld [vmem:[#allocation7 + $0x48] sm:$0xff] }
 0x6bc   : > { %3067 = vmatpush3.bf16.msra.mxu0 %v3066_v25  ;;  %v1296_v25 = vld [vmem:[#allocation5 + $0xb8] sm:$0xff] }
 0x6bd   : > { %3068 = vmatprep.subr.bf16.mxu0 %v3567_v5 }
 0x6c0   : > { %3070 = vmatpush3.bf16.msra.mxu0 %v3069_v32  ;;  %v3100_v32 = vpack.c.bf16 %v1296_v25, %v1294_v22  ;;  %v1432_v22 = vld [vmem:[#allocation7 + $0xd0] sm:$0xff] }
 0x6c1   : > { %3071 = vmatprep.subr.bf16.mxu0 %v3567_v5 }
 0x6c4   : > { %3073 = vmatpush3.bf16.msra.mxu0 %v3072_v35  ;;  %v3102_v35 = vpack.c.bf16 %v1295_v30, %v1293_v28  ;;  %v1416_v30 = vld [vmem:[#allocation7 + $0x50] sm:$0xff] }
 0x6c5   : > { %3074 = vmatprep.subr.bf16.mxu0 %v3567_v5 }
 0x6c8   : > { %3076 = vmatpush3.bf16.msra.mxu0 %v3075_v38  ;;  %v1299_v38 = vld [vmem:[#allocation5 + $0xd0] sm:$0xff] }
 0x6c9   : > { %3077 = vmatprep.subr.bf16.mxu0 %v3567_v5 }
 0x6cc   : > { %3079 = vmatpush3.bf16.msra.mxu0 %v3078_v41  ;;  %v3106_v41 = vpack.c.bf16 %v1299_v38, %v1297_v37  ;;  %v1418_v37 = vld [vmem:[#allocation7 + $0x60] sm:$0xff]  ;;  %v1419_v38 = vld [vmem:[#allocation7 + $0x68] sm:$0xff] }
 0x782   : > { %v1143_v42 = vpop.f32.mrb[8].mxu0 }
 0x783   : > { %1148 = vrot.lane.b32.xlu1 %v1143_v42, %s3570_s29  ;;  %v2874_v43 = vpop.f32.mrb[9].mxu0  ;;  %v3108_v42 = vpack.c.bf16 %v1304_v40, %v1302_v39  ;;  %v1436_v39 = vld [vmem:[#allocation7 + $0xf0] sm:$0xff]  ;;  %v1437_v40 = vld [vmem:[#allocation7 + $0xf8] sm:$0xff] }
 0x784   : > { %v1301_v43 = vld [vmem:[#allocation5 + $0xe0] sm:$0xff] }
 0x7f5   : > { %v1149_v44 = vpop.permute.xlu1 %1148 }
 0x7f6   : > { %v1151_v46 = vsel %vm819_vm1, %v3875_v61, %v1149_v44  ;;  %v3084_v61 = vpack.c.bf16 %v1280_v59, %v1278_v58  ;;  %v1303_v44 = vld [vmem:[#allocation5 + $0xf0] sm:$0xff]  ;;  %v2622_v58 = vld [vmem:[%s4172_s8] ss:$0 sm:$0xff] }
 0x7f7   : > { %2908 = vmatmul.mubr.f32.vlgmr.msra.gmra.mrb[10].mxu0 %v1151_v46  ;;  %v3110_v46 = vpack.c.bf16 %v1303_v44, %v1301_v43  ;;  %v1420_v43 = vld [vmem:[#allocation7 + $0x70] sm:$0xff]  ;;  %v1421_v44 = vld [vmem:[#allocation7 + $0x78] sm:$0xff] }
 0x7f8   : > { %3085 = vmatprep.subr.bf16.mxu1 %v3084_v61 }
 0x7f9   : > { %3087 = vmatpush1.bf16.msra.mxu1 %v3086_v2  ;;  %v1408_v2 = vld [vmem:[#allocation7 + $0x10] sm:$0xff] }
 0x7fa   : > { %3089 = vmatprep.subr.bf16.mxu1 %v3088_v3  ;;  %v1409_v3 = vld [vmem:[#allocation7 + $0x18] sm:$0xff] }
 0x8ca   : > { %v1241_v48 = vpop.f32.mrb[10].mxu0 }
 0x8cb   : > { %v1242_v49 = vadd.f32 %v2621_v47, %v1241_v48  ;;  %v2909_v50 = vpop.f32.mrb[11].mxu0  ;;  %v1422_v47 = vld [vmem:[#allocation7 + $0x80] sm:$0xff]  ;;  %v1423_v48 = vld [vmem:[#allocation7 + $0x88] sm:$0xff] }
 0x8cc   : > { %v3112_v50 = vpack.c.bf16 %v1423_v48, %v1422_v47  ;;  %v1305_v47 = vld [vmem:[%s4175_s11] sm:$0x3] }
 0x8cd   : > { %v1245_v51 = vadd.f32 %v1242_v49, %v3826_v24  ;;  %v1281_v24 = vld [vmem:[#allocation5 + $0x40] sm:$0xff]  ;;  %v1310_v48 = vrot.slane %v1305_v47, %v3836_v27 }
 0x8ce   : > { %v3090_v6 = vpack.c.bf16 %v1283_v4, %v1281_v24  ;;  %v1406_v49 = vld [vmem:[#allocation7] sm:$0xff]  ;;  %3113 = vmatprep.subr.bf16.mxu0 %v3112_v50  ;;  %v3118_v24 = vpack.c.bf16 %v1409_v3, %v1408_v2 }
 0x8cf   : > { %1248 = vadd.xlane.f32.xlu1 %v1245_v51  ;;  %v1426_v4 = vld [vmem:[#allocation7 + $0xa0] sm:$0xff] }
 0x8d0   : > { %3091 = vmatpush1.bf16.msra.mxu1 %v3090_v6  ;;  %v1427_v6 = vld [vmem:[#allocation7 + $0xa8] sm:$0xff] }
 0x8d1   : > { %3093 = vmatprep.subr.bf16.mxu1 %v3092_v13  ;;  %v3124_v13 = vpack.c.bf16 %v1429_v12, %v1428_v11  ;;  %v2624_v11 = vld [vmem:[%s4177_s13] ss:$0 sm:$0xff] }
 0x8d4   : > { %3095 = vmatpush1.bf16.msra.mxu1 %v3094_v16  ;;  %v1430_v16 = vld [vmem:[#allocation7 + $0xc0] sm:$0xff] }
 0x8d5   : > { %3097 = vmatprep.subr.bf16.mxu1 %v3096_v19  ;;  %v1414_v19 = vld [vmem:[#allocation7 + $0x40] sm:$0xff]  ;;  %v3128_v21 = vpack.c.bf16 %v1431_v18, %v1430_v16  ;;  %v1545_v16 = vld [vmem:[#allocation2 + $0x188] sm:$0xff] }
 0x8d6   : > { %v3130_v25 = vpack.c.bf16 %v1415_v20, %v1414_v19  ;;  %v1544_v18 = vld [vmem:[#allocation2 + $0x180] sm:$0xff]  ;;  %v1547_v20 = vld [vmem:[#allocation2 + $0x198] sm:$0xff] }
 0x8d8   : > { %3099 = vmatpush1.bf16.msra.mxu1 %v3098_v23  ;;  %v1433_v23 = vld [vmem:[#allocation7 + $0xd8] sm:$0xff] }
 0x8d9   : > { %3101 = vmatprep.subr.bf16.mxu1 %v3100_v32  ;;  %v3132_v28 = vpack.c.bf16 %v1433_v23, %v1432_v22  ;;  %v1417_v32 = vld [vmem:[#allocation7 + $0x58] sm:$0xff]  ;;  %v1549_v22 = vld [vmem:[#allocation2 + $0x1a8] sm:$0xff]  ;;  %v3146_v23 = vpack.c.bf16 %v1547_v20, %v1544_v18  ;;  %v1580_v20 = vld [vmem:[#allocation2 + $0x2a0] sm:$0xff] }
 0x8dc   : > { %3103 = vmatpush1.bf16.msra.mxu1 %v3102_v35  ;;  %v3134_v35 = vpack.c.bf16 %v1417_v32, %v1416_v30  ;;  %v1554_v30 = vld [vmem:[#allocation2 + $0x1d0] sm:$0xff] }
 0x8dd   : > { %3105 = vmatprep.subr.bf16.mxu1 %v3104_v36  ;;  %v3136_v36 = vpack.c.bf16 %v1435_v34, %v1434_v33  ;;  %v1550_v32 = vld [vmem:[#allocation2 + $0x1b0] sm:$0xff]  ;;  %v1553_v34 = vld [vmem:[#allocation2 + $0x1c8] sm:$0xff] }
 0x8e0   : > { %3107 = vmatpush1.bf16.msra.mxu1 %v3106_v41  ;;  %v3138_v41 = vpack.c.bf16 %v1419_v38, %v1418_v37  ;;  %v1557_v38 = vld [vmem:[#allocation2 + $0x1e8] sm:$0xff] }
 0x8e1   : > { %3109 = vmatprep.subr.bf16.mxu1 %v3108_v42  ;;  %v3140_v42 = vpack.c.bf16 %v1437_v40, %v1436_v39  ;;  %v1560_v39 = vld [vmem:[#allocation2 + $0x200] sm:$0xff] }
 0x8e2   : > { %v1556_v40 = vld [vmem:[#allocation2 + $0x1e0] sm:$0xff] }
 0x8e4   : > { %3111 = vmatpush1.bf16.msra.mxu1 %v3110_v46  ;;  %v3142_v46 = vpack.c.bf16 %v1421_v44, %v1420_v43  ;;  %v1558_v43 = vld [vmem:[#allocation2 + $0x1f0] sm:$0xff]  ;;  %v1561_v44 = vld [vmem:[#allocation2 + $0x208] sm:$0xff] }
 0x95c   : > { %v1249_v7 = vpop.xlane.xlu1 %1248 }
 0x95d   : > { %v1250_v8 = vmul.f32 0.0078125, %v1249_v7  ;;  %v3120_v7 = vpack.c.bf16 %v1427_v6, %v1426_v4 }
 0x95f   : > { %v1251_v9 = vsub.f32 %v1245_v51, %v1250_v8  ;;  %v1407_v51 = vld [vmem:[#allocation7 + $0x8] sm:$0xff]  ;;  %v1410_v8 = vld [vmem:[#allocation7 + $0x20] sm:$0xff] }
 0x960   : > { %v3114_v52 = vpack.c.bf16 %v1407_v51, %v1406_v49  ;;  %v1314_v49 = vrot.slane %v1305_v47, %v3842_v29  ;;  %v3183_v47 = vpack.c.bf16 %v1561_v44, %v1558_v43  ;;  %v2625_v43 = vld [vmem:[%s4178_s14] ss:$0 sm:$0xff] }
 0x961   : > { %v1252_v10 = vmul.f32 %v1251_v9, %v1251_v9 }
 0x962   : > { %3115 = vmatpush3.bf16.msra.mxu0 %v3114_v52 }
 0x963   : > { %1253 = vadd.xlane.f32.xlu0 %v1252_v10  ;;  %3117 = vmatprep.subr.bf16.mxu0 %v3116_v1 }
 0x966   : > { %3119 = vmatpush3.bf16.msra.mxu0 %v3118_v24 }
 0x967   : > { %3121 = vmatprep.subr.bf16.mxu0 %v3120_v7 }
 0x9f0   : > { %v1254_v53 = vpop.xlane.xlu0 %1253 }
 0x9f1   : > { %v1255_v54 = vmul.f32 0.0078125, %v1254_v53 }
 0x9f3   : > { %v1256_v55 = vadd.f32 1e-12, %v1255_v54 }
 0x9f5   : > { %3378 = vrsqrt.f32 %v1256_v55 }
 0x9ff   : > { %v3379_v56 = vpop.eup %3378 }
 0xa00   : > { %v1258_v59 = vmul.f32 %v3379_v56, %v1251_v9  ;;  %v1411_v9 = vld [vmem:[#allocation7 + $0x28] sm:$0xff] }
 0xa01   : > { %v3122_v10 = vpack.c.bf16 %v1411_v9, %v1410_v8 }
 0xa02   : > { %v1265_v61 = vmul.f32 %v2622_v58, %v1258_v59 }
 0xa03   : > { %3123 = vmatpush3.bf16.msra.mxu0 %v3122_v10 }
 0xa04   : > { %v3953_v62 = vadd.f32 %v2623_v60, %v1265_v61  ;;  %3125 = vmatprep.subr.bf16.mxu0 %v3124_v13 }
 0xa06   : > { %1382 = vmatmul.mubr.f32.vlgmr.msra.gmra.mrb[2].mxu1 %v3953_v62 }
 0xa07   : > { %1674 = vmatprep.mubr.f32.mxu1 %v3568_v57  ;;  %3127 = vmatpush3.bf16.msra.mxu0 %v3126_v17  ;;  %v1548_v17 = vld [vmem:[#allocation2 + $0x1a0] sm:$0xff] }
 0xa08   : > { %3129 = vmatprep.subr.bf16.mxu0 %v3128_v21  ;;  %v3144_v19 = vpack.c.bf16 %v1548_v17, %v1545_v16  ;;  %v1546_v21 = vld [vmem:[#allocation2 + $0x190] sm:$0xff]  ;;  %v1581_v16 = vld [vmem:[#allocation2 + $0x2a8] sm:$0xff]  ;;  %v1584_v17 = vld [vmem:[#allocation2 + $0x2c0] sm:$0xff] }
 0xa0a   : > { %3145 = vmatprep.subr.bf16.mxu1 %v3144_v19  ;;  %v3168_v19 = vpack.c.bf16 %v1584_v17, %v1581_v16 }
 0xa0b   : > { %3131 = vmatpush3.bf16.msra.mxu0 %v3130_v25  ;;  %v3177_v25 = vpack.c.bf16 %v1549_v22, %v1546_v21  ;;  %3147 = vmatpush1.bf16.msra.mxu1 %v3146_v23  ;;  %v1583_v21 = vld [vmem:[#allocation2 + $0x2b8] sm:$0xff]  ;;  %v1582_v22 = vld [vmem:[#allocation2 + $0x2b0] sm:$0xff]  ;;  %v1585_v23 = vld [vmem:[#allocation2 + $0x2c8] sm:$0xff] }
 0xa0c   : > { %3133 = vmatprep.subr.bf16.mxu0 %v3132_v28  ;;  %v1551_v28 = vld [vmem:[#allocation2 + $0x1b8] sm:$0xff] }
 0xa0d   : > { %v3148_v33 = vpack.c.bf16 %v1554_v30, %v1551_v28  ;;  %v1590_v28 = vld [vmem:[#allocation2 + $0x2f0] sm:$0xff]  ;;  %v3170_v30 = vpack.c.bf16 %v1583_v21, %v1580_v20 }
 0xa0f   : > { %3135 = vmatpush3.bf16.msra.mxu0 %v3134_v35  ;;  %v1552_v35 = vld [vmem:[#allocation2 + $0x1c0] sm:$0xff]  ;;  %3149 = vmatprep.subr.bf16.mxu1 %v3148_v33 }
 0xa10   : > { %3137 = vmatprep.subr.bf16.mxu0 %v3136_v36  ;;  %v1555_v36 = vld [vmem:[#allocation2 + $0x1d8] sm:$0xff] }
 0xa11   : > { %v3180_v37 = vpack.c.bf16 %v1555_v36, %v1552_v35  ;;  %v1589_v35 = vld [vmem:[#allocation2 + $0x2e8] sm:$0xff]  ;;  %v1588_v36 = vld [vmem:[#allocation2 + $0x2e0] sm:$0xff] }
 0xa13   : > { %3139 = vmatpush3.bf16.msra.mxu0 %v3138_v41  ;;  %v3152_v41 = vpack.c.bf16 %v1560_v39, %v1557_v38 }
 0xa14   : > { %3141 = vmatprep.subr.bf16.mxu0 %v3140_v42  ;;  %v1559_v42 = vld [vmem:[#allocation2 + $0x1f8] sm:$0xff] }
 0xa17   : > { %3143 = vmatpush3.bf16.msra.mxu0 %v3142_v46  ;;  %v3154_v46 = vpack.c.bf16 %v1559_v42, %v1556_v40 }
 0xa18   : > { %3176 = vmatprep.subr.bf16.mxu0 %v3567_v5 }
 0xad9   : > { %v1383_v50 = vpop.f32.mrb[2].mxu1 }
 0xada   : > { %v1384_v51 = vadd.f32 %v1383_v50, %v1310_v48  ;;  %v1385_v52 = vpop.f32.mrb[3].mxu1 }
 0xadb   : > { %v1386_v53 = vadd.f32 %v1385_v52, %v1314_v49  ;;  %v1563_v52 = vld [vmem:[#allocation2 + $0x218] sm:$0xff] }
 0xadc   : > { %v1390_v54 = vmul.f32 0.044715, %v1384_v51  ;;  %v1388_v7 = vmul.f32 0.5, %v1384_v51 }
 0xadd   : > { %v1391_v55 = vmul.f32 0.044715, %v1386_v53  ;;  %v1389_v4 = vmul.f32 0.5, %v1386_v53 }
 0xade   : > { %v1392_v56 = vmul.f32 %v1390_v54, %v1384_v51 }
 0xadf   : > { %v1393_v58 = vmul.f32 %v1391_v55, %v1386_v53  ;;  %v1562_v55 = vld [vmem:[#allocation2 + $0x210] sm:$0xff] }
 0xae0   : > { %v1394_v59 = vmul.f32 %v1392_v56, %v1384_v51  ;;  %v1565_v56 = vld [vmem:[#allocation2 + $0x228] sm:$0xff] }
 0xae1   : > { %v1395_v60 = vmul.f32 %v1393_v58, %v1386_v53  ;;  %v1564_v58 = vld [vmem:[#allocation2 + $0x220] sm:$0xff] }
 0xae2   : > { %v1396_v61 = vadd.f32 %v1394_v59, %v1384_v51  ;;  %v3158_v59 = vpack.c.bf16 %v1565_v56, %v1562_v55 }
 0xae3   : > { %v1397_v63 = vadd.f32 %v1395_v60, %v1386_v53  ;;  %v1566_v53 = vld [vmem:[#allocation2 + $0x230] sm:$0xff]  ;;  %v1567_v60 = vld [vmem:[#allocation2 + $0x238] sm:$0xff] }
 0xae4   : > { %v1398_v0 = vmul.f32 0.7978846, %v1396_v61  ;;  %v3156_v54 = vpack.c.bf16 %v1566_v53, %v1563_v52  ;;  %v3186_v61 = vpack.c.bf16 %v1567_v60, %v1564_v58 }
 0xae5   : > { %v1399_v1 = vmul.f32 0.7978846, %v1397_v63  ;;  %v1569_v63 = vld [vmem:[#allocation2 + $0x248] sm:$0xff] }
 0xae6   : > { %3380 = vtanh.f32 %v1398_v0  ;;  %v1572_v0 = vld [vmem:[#allocation2 + $0x260] sm:$0xff] }
 0xae7   : > { %3382 = vtanh.f32 %v1399_v1  ;;  %v3160_v1 = vpack.c.bf16 %v1572_v0, %v1569_v63 }
 0xaf0   : > { %v3381_v2 = vpop.eup %3380 }
 0xaf1   : > { %v3383_v3 = vpop.eup %3382  ;;  %v1402_v24 = vadd.f32 1.0, %v3381_v2  ;;  %v1568_v2 = vld [vmem:[#allocation2 + $0x240] sm:$0xff] }
 0xaf2   : > { %v1403_v6 = vadd.f32 1.0, %v3383_v3  ;;  %v1571_v3 = vld [vmem:[#allocation2 + $0x258] sm:$0xff] }
 0xaf3   : > { %v1404_v9 = vmul.f32 %v1402_v24, %v1388_v7  ;;  %v1570_v24 = vld [vmem:[#allocation2 + $0x250] sm:$0xff]  ;;  %v1575_v7 = vld [vmem:[#allocation2 + $0x278] sm:$0xff] }
 0xaf4   : > { %v1405_v8 = vmul.f32 %v1403_v6, %v1389_v4  ;;  %v3162_v4 = vpack.c.bf16 %v1571_v3, %v1568_v2  ;;  %v1573_v6 = vld [vmem:[#allocation2 + $0x268] sm:$0xff] }
 0xaf6   : > { %1509 = vmatprep.mubr.f32.mxu0 %v1405_v8  ;;  %v1578_v8 = vld [vmem:[#allocation2 + $0x290] sm:$0xff] }
 0xaf7   : > { %1510 = vmatmul.mubr.f32.vlgmr.msra.gmra.mrb[12].mxu0 %v1404_v9  ;;  %v3189_v9 = vpack.c.bf16 %v1573_v6, %v1570_v24 }
 0xaf8   : > { %2942 = vmatprep.mubr.msk.f32.mxu0 %vm3569_vm0, %v3568_v57  ;;  %3178 = vmatpush3.bf16.msra.mxu0 %v3177_v25  ;;  %v1587_v25 = vld [vmem:[#allocation2 + $0x2d8] sm:$0xff] }
 0xaf9   : > { %3179 = vmatprep.subr.bf16.mxu0 %v3567_v5  ;;  %v3172_v33 = vpack.c.bf16 %v1590_v28, %v1587_v25  ;;  %v2634_v28 = vld [vmem:[%s4170_s6 + $0x80] sm:$0xff] }
 0xafc   : > { %3181 = vmatpush3.bf16.msra.mxu0 %v3180_v37 }
 0xafd   : > { %3182 = vmatprep.subr.bf16.mxu0 %v3567_v5 }
 0xb00   : > { %3184 = vmatpush3.bf16.msra.mxu0 %v3183_v47 }
 0xb01   : > { %3185 = vmatprep.subr.bf16.mxu0 %v3567_v5 }
 0xb04   : > { %3187 = vmatpush3.bf16.msra.mxu0 %v3186_v61 }
 0xb05   : > { %3188 = vmatprep.subr.bf16.mxu0 %v3567_v5 }
 0xb08   : > { %3190 = vmatpush3.bf16.msra.mxu0 %v3189_v9 }
 0xb09   : > { %3191 = vmatprep.subr.bf16.mxu0 %v3567_v5 }
 0xbca   : > { %v2740_v10 = vpop.f32.mrb[12].mxu0 }
 0xbcb   : > { %v2741_v12 = vpop.f32.mrb[13].mxu0 }
 0xbcc   : > { %v2742_v13 = vadd.f32 %v2741_v12, %v2740_v10  ;;  %v3164_v10 = vpack.c.bf16 %v1578_v8, %v1575_v7  ;;  %v1577_v12 = vld [vmem:[#allocation2 + $0x288] sm:$0xff] }
 0xbce   : > { %v1512_v14 = vadd.f32 %v2742_v13, %v2624_v11  ;;  %v1574_v11 = vld [vmem:[#allocation2 + $0x270] sm:$0xff]  ;;  %v1576_v13 = vld [vmem:[#allocation2 + $0x280] sm:$0xff] }
 0xbd0   : > { %v1515_v15 = vadd.f32 %v1512_v14, %v3953_v62  ;;  %v3150_v62 = vpack.c.bf16 %v1553_v34, %v1550_v32  ;;  %v3166_v14 = vpack.c.bf16 %v1577_v12, %v1574_v11  ;;  %v3195_v32 = vpack.c.bf16 %v1585_v23, %v1582_v22  ;;  %v1586_v34 = vld [vmem:[#allocation2 + $0x2d0] sm:$0xff] }
 0xbd1   : > { %v3174_v37 = vpack.c.bf16 %v1589_v35, %v1586_v34  ;;  %v2637_v34 = vld [vmem:[%s4170_s6 + $0x98] sm:$0xff] }
 0xbd2   : > { %1518 = vadd.xlane.f32.xlu0 %v1515_v15  ;;  %3151 = vmatpush1.bf16.msra.mxu1 %v3150_v62  ;;  %v1591_v62 = vld [vmem:[#allocation2 + $0x2f8] sm:$0xff] }
 0xbd3   : > { %3153 = vmatprep.subr.bf16.mxu1 %v3152_v41  ;;  %v3198_v38 = vpack.c.bf16 %v1591_v62, %v1588_v36  ;;  %v2639_v36 = vld [vmem:[%s4170_s6 + $0xa8] sm:$0xff] }
 0xbd6   : > { %3155 = vmatpush1.bf16.msra.mxu1 %v3154_v46  ;;  %v2626_v46 = vld [vmem:[%s4219_s15] ss:$0 sm:$0xff] }
 0xbd7   : > { %3157 = vmatprep.subr.bf16.mxu1 %v3156_v54 }
 0xbda   : > { %3159 = vmatpush1.bf16.msra.mxu1 %v3158_v59 }
 0xbdb   : > { %3161 = vmatprep.subr.bf16.mxu1 %v3160_v1 }
 0xbde   : > { %3163 = vmatpush1.bf16.msra.mxu1 %v3162_v4 }
 0xbdf   : > { %3165 = vmatprep.subr.bf16.mxu1 %v3164_v10 }
 0xbe2   : > { %3167 = vmatpush1.bf16.msra.mxu1 %v3166_v14 }
 0xbe3   : > { %3169 = vmatprep.subr.bf16.mxu1 %v3168_v19 }
 0xbe6   : > { %3171 = vmatpush1.bf16.msra.mxu1 %v3170_v30  ;;  %v2635_v30 = vld [vmem:[%s4170_s6 + $0x88] sm:$0xff] }
 0xbe7   : > { %3173 = vmatprep.subr.bf16.mxu1 %v3172_v33  ;;  %v3201_v33 = vpack.c.bf16 %v2635_v30, %v2634_v28  ;;  %v2228_v28 = vld [vmem:[#allocation5 + $0x198] sm:$0xff] }
 0xbea   : > { %3175 = vmatpush1.bf16.msra.mxu1 %v3174_v37  ;;  %v2640_v37 = vld [vmem:[%s4170_s6 + $0xb0] sm:$0xff] }
 0xbeb   : > { %2945 = vmatprep.subr.mxu1 %v3568_v57 }
 0xc5f   : > { %v1519_v48 = vpop.xlane.xlu0 %1518 }
 0xc60   : > { %v1520_v49 = vmul.f32 0.0078125, %v1519_v48 }
 0xc62   : > { %v3972_v50 = vsub.f32 %v1515_v15, %v1520_v49  ;;  %v1579_v15 = vld [vmem:[#allocation2 + $0x298] sm:$0xff]  ;;  %v2627_v49 = vld [vmem:[%s4169_s5 + $0x3] sm:$0x7] }
 0xc63   : > { %v3192_v18 = vpack.c.bf16 %v1579_v15, %v1576_v13  ;;  %v1606_v58 = vrot.slane %v2627_v49, %v666_v31 }
 0xc64   : > { %v1522_v51 = vmul.f32 %v3972_v50, %v3972_v50 }
 0xc65   : > { %3193 = vmatpush3.bf16.msra.mxu0 %v3192_v18 }
 0xc66   : > { %1523 = vadd.xlane.f32.xlu1 %v1522_v51  ;;  %3194 = vmatprep.subr.bf16.mxu0 %v3567_v5  ;;  %v1602_v51 = vrot.slane %v2627_v49, %v3842_v29 }
 0xc69   : > { %3196 = vmatpush3.bf16.msra.mxu0 %v3195_v32  ;;  %v2636_v32 = vld [vmem:[%s4170_s6 + $0x90] sm:$0xff] }
 0xc6a   : > { %3197 = vmatprep.subr.bf16.mxu0 %v3567_v5  ;;  %v3204_v35 = vpack.c.bf16 %v2637_v34, %v2636_v32  ;;  %v2225_v32 = vld [vmem:[#allocation5 + $0x180] sm:$0xff]  ;;  %v2230_v34 = vld [vmem:[#allocation5 + $0x1a8] sm:$0xff] }
 0xc6d   : > { %3199 = vmatpush3.bf16.msra.mxu0 %v3198_v38  ;;  %v2641_v38 = vld [vmem:[%s4170_s6 + $0xb8] sm:$0xff] }
 0xcf3   : > { %v1524_v39 = vpop.xlane.xlu1 %1523 }
 0xcf4   : > { %v1525_v40 = vmul.f32 0.0078125, %v1524_v39  ;;  %v3210_v39 = vpack.c.bf16 %v2641_v38, %v2640_v37  ;;  %v2234_v38 = vld [vmem:[#allocation5 + $0x1c8] sm:$0xff] }
 0xcf6   : > { %v1526_v41 = vadd.f32 1e-12, %v1525_v40  ;;  %v2642_v40 = vld [vmem:[%s4170_s6 + $0xc0] sm:$0xff] }
 0xcf8   : > { %3384 = vrsqrt.f32 %v1526_v41  ;;  %v2643_v41 = vld [vmem:[%s4170_s6 + $0xc8] sm:$0xff] }
 0xd02   : > { %v3385_v42 = vpop.eup %3384 }
 0xd03   : > { %v1528_v44 = vmul.f32 %v3385_v42, %v3972_v50  ;;  %v1598_v50 = vrot.slane %v2627_v49, %v3836_v27  ;;  %v3213_v42 = vpack.c.bf16 %v2643_v41, %v2642_v40  ;;  %v2647_v49 = vld [vmem:[%s4170_s6 + $0xe8] sm:$0xff] }
 0xd05   : > { %v1535_v47 = vmul.f32 %v2625_v43, %v1528_v44  ;;  %v2644_v43 = vld [vmem:[%s4170_s6 + $0xd0] sm:$0xff]  ;;  %v2645_v44 = vld [vmem:[%s4170_s6 + $0xd8] sm:$0xff] }
 0xd07   : > { %v3988_v48 = vadd.f32 %v2626_v46, %v1535_v47  ;;  %v3216_v46 = vpack.c.bf16 %v2645_v44, %v2644_v43  ;;  %v2646_v47 = vld [vmem:[%s4170_s6 + $0xe0] sm:$0xff]  ;;  %v2235_v43 = vld [vmem:[#allocation5 + $0x1d0] sm:$0xff]  ;;  %v2238_v44 = vld [vmem:[#allocation5 + $0x1e8] sm:$0xff] }
 0xd09   : > { %1675 = vmatmul.mubr.f32.vlgmr.msra.gmra.mrb[4].mxu1 %v3988_v48  ;;  %2943 = vmatmul.mubr.f32.vlgmr.msra.gmra.mrb[14].mxu0 %v3988_v48 }
 0xd0a   : > { %2947 = vmatprep.mubr.msk.f32.mxu1 %vm3569_vm0, %v3568_v57  ;;  %2318 = vmatprep.mubr.f32.mxu0 %v3568_v57 }
 0xddc   : > { %v1676_v52 = vpop.f32.mrb[4].mxu1  ;;  %v1747_v53 = vpop.f32.mrb[14].mxu0 }
 0xddd   : > { %v1677_v54 = vadd.f32 %v1676_v52, %v1598_v50  ;;  %v1678_v55 = vpop.f32.mrb[5].mxu1  ;;  %v2944_v56 = vpop.f32.mrb[15].mxu0  ;;  %v1748_v61 = vadd.f32 %v1747_v53, %v1606_v58  ;;  %v3219_v50 = vpack.c.bf16 %v2647_v49, %v2646_v47  ;;  %v2649_v52 = vld [vmem:[%s4170_s6 + $0xf8] sm:$0xff] }
 0xdde   : > { %v1679_v59 = vadd.f32 %v1678_v55, %v1602_v51  ;;  %v2648_v51 = vld [vmem:[%s4170_s6 + $0xf0] sm:$0xff] }
 0xddf   : > { %v1751_v60 = vmul.f32 0.125, %v1677_v54  ;;  %v3222_v53 = vpack.c.bf16 %v2649_v52, %v2648_v51  ;;  %v2239_v51 = vld [vmem:[#allocation5 + $0x1f0] sm:$0xff] }
 0xde0   : > { %2946 = vmatpush3.xpose.msk.msra.mxu1 %vm819_vm1, %v1679_v59 }
 0xde1   : > { %2950 = vmatprep.subr.mxu1 %v3568_v57 }
 0xde3   : > { %2948 = vmatmul.mubr.msk.f32.vlgmr.msra.gmra.mrb[6].mxu1 %vm819_vm1, %v1751_v60 }
 0xde4   : > { %2951 = vmatpush3.msra.mxu1 %v1748_v61  ;;  %2952 = vmatprep.mubr.msk.f32.mxu1 %vm3569_vm0, %v3568_v57 }
 0xde5   : > { %2955 = vmatprep.subr.mxu1 %v3568_v57 }
 0xeb6   : > { %v1824_v63 = vpop.f32.mrb[6].mxu1 }
 0xeb7   : > { %v1825_v0 = vadd.f32 %v1824_v63, %v3861_v45  ;;  %v2949_v26 = vpop.f32.mrb[7].mxu1 }
 0xeb8   : > { %v2212_v26 = vld [vmem:[#allocation5 + $0x118] sm:$0xff] }
 0xeb9   : > { %v1828_v31 = vsel %vm896_vm2, %v1825_v0, -inf }
 0xeba   : > { %1829 = vmax.xlane.f32.xlu0 %v1828_v31  ;;  %v2209_v31 = vld [vmem:[#allocation5 + $0x100] sm:$0xff] }
 0xed0   : > { %1914 = vrot.lane.b32.xlu0 %v1679_v59, %s3570_s29  ;;  %v2651_v59 = vld [vmem:[%s4171_s7 + $0x1] ss:$0 sm:$0xff] }
 0xf47   : > { %v1830_v1 = vpop.xlane.xlu0 %1829 }
 0xf48   : > { %v1831_v2 = vsub.f32 %v1825_v0, %v1830_v1 }
 0xf4a   : > { %v1832_v3 = vmul.f32 1.442695, %v1831_v2  ;;  %v2211_v2 = vld [vmem:[#allocation5 + $0x110] sm:$0xff] }
 0xf4b   : > { %v1915_v9 = vpop.permute.xlu0 %1914 }
 0xf4c   : > { %3386 = vpow2.f32 %v1832_v3  ;;  %v2214_v3 = vld [vmem:[#allocation5 + $0x128] sm:$0xff] }
 0xf56   : > { %v3387_v24 = vpop.eup %3386 }
 0xf57   : > { %v1834_v4 = vsel %vm896_vm2, %v3387_v24, 0.0 }
 0xf58   : > { %1835 = vadd.xlane.f32.xlu1 %v1834_v4  ;;  %v3226_v4 = vpack.c.bf16 %v2211_v2, %v2209_v31  ;;  %v2655_v31 = vld [vmem:[%s4173_s9 + $0x1] ss:$0 sm:$0xff] }
 0xf69   : > { %1912 = vrot.lane.b32.xlu1 %v1751_v60, %s3570_s29 }
 0xfe5   : > { %v1836_v6 = vpop.xlane.xlu1 %1835 }
 0xfe6   : > { %3388 = vrcp.f32 %v1836_v6 }
 0xfe9   : > { %v1913_v10 = vpop.permute.xlu1 %1912 }
 0xff0   : > { %v3389_v7 = vpop.eup %3388 }
 0xff1   : > { %v1838_v8 = vmul.f32 %v3389_v7, %v3387_v24  ;;  %v2216_v24 = vld [vmem:[#allocation5 + $0x138] sm:$0xff]  ;;  %v2213_v7 = vld [vmem:[#allocation5 + $0x120] sm:$0xff] }
 0xff2   : > { %v3228_v6 = vpack.c.bf16 %v2216_v24, %v2214_v3  ;;  %v2362_v3 = vld [vmem:[#allocation7 + $0x190] sm:$0xff]  ;;  %v2363_v24 = vld [vmem:[#allocation7 + $0x198] sm:$0xff] }
 0xff3   : > { %2953 = vmatmul.mubr.msk.f32.vlgmr.msra.gmra.mrb[8].mxu1 %vm896_vm2, %v1838_v8  ;;  %v2215_v8 = vld [vmem:[#allocation5 + $0x130] sm:$0xff] }
 0xff4   : > { %2956 = vmatpush3.xpose.msk.msra.mxu1 %vm819_vm1, %v1915_v9  ;;  %2957 = vmatprep.mubr.msk.f32.mxu1 %vm3569_vm0, %v3568_v57  ;;  %v2218_v9 = vld [vmem:[#allocation5 + $0x148] sm:$0xff] }
 0xff5   : > { %2960 = vmatprep.subr.mxu1 %v3568_v57 }
 0xff7   : > { %2958 = vmatmul.mubr.msk.f32.vlgmr.msra.gmra.mrb[10].mxu1 %vm819_vm1, %v1913_v10  ;;  %v2220_v10 = vld [vmem:[#allocation5 + $0x158] sm:$0xff] }
 0xff8   : > { %2962 = vmatprep.mubr.msk.f32.mxu1 %vm3569_vm0, %v3568_v57 }
0x10c6   : > { %v4021_v11 = vpop.f32.mrb[8].mxu1 }
0x10c7   : > { %v2954_v12 = vpop.f32.mrb[9].mxu1 }
0x10c8   : > { %v3232_v12 = vpack.c.bf16 %v2220_v10, %v2218_v9  ;;  %v2364_v9 = vld [vmem:[#allocation7 + $0x1a0] sm:$0xff]  ;;  %v2365_v10 = vld [vmem:[#allocation7 + $0x1a8] sm:$0xff] }
0x10ca   : > { %v1986_v13 = vpop.f32.mrb[10].mxu1 }
0x10cb   : > { %v1987_v14 = vadd.f32 %v1986_v13, %v3861_v45  ;;  %v2959_v15 = vpop.f32.mrb[11].mxu1  ;;  %v2219_v13 = vld [vmem:[#allocation5 + $0x150] sm:$0xff] }
0x10cd   : > { %v1990_v16 = vsel %vm896_vm2, %v1987_v14, -inf }
0x10ce   : > { %1991 = vmax.xlane.f32.xlu1 %v1990_v16 }
0x115b   : > { %v1992_v17 = vpop.xlane.xlu1 %1991 }
0x115c   : > { %v1993_v18 = vsub.f32 %v1987_v14, %v1992_v17 }
0x115e   : > { %v1994_v19 = vmul.f32 1.442695, %v1993_v18 }
0x1160   : > { %3390 = vpow2.f32 %v1994_v19  ;;  %v2222_v19 = vld [vmem:[#allocation5 + $0x168] sm:$0xff] }
0x116a   : > { %v3391_v20 = vpop.eup %3390 }
0x116b   : > { %v1996_v21 = vsel %vm896_vm2, %v3391_v20, 0.0 }
0x116c   : > { %1997 = vadd.xlane.f32.xlu0 %v1996_v21 }
0x1182   : > { %2002 = vrot.lane.b32.xlu0 %v1748_v61, %s3570_s29 }
0x11f9   : > { %v1998_v22 = vpop.xlane.xlu0 %1997 }
0x11fa   : > { %3392 = vrcp.f32 %v1998_v22  ;;  %v2221_v22 = vld [vmem:[#allocation5 + $0x160] sm:$0xff] }
0x11fd   : > { %v2003_v23 = vpop.permute.xlu0 %2002 }
0x11fe   : > { %2961 = vmatpush3.msra.mxu1 %v2003_v23  ;;  %v2223_v23 = vld [vmem:[#allocation5 + $0x170] sm:$0xff] }
0x11ff   : > { %3200 = vmatprep.subr.bf16.mxu1 %v3567_v5 }
0x1204   : > { %v3393_v45 = vpop.eup %3392 }
0x1205   : > { %v2000_v25 = vmul.f32 %v3393_v45, %v3391_v20  ;;  %v2224_v20 = vld [vmem:[#allocation5 + $0x178] sm:$0xff]  ;;  %v3238_v45 = vpack.c.bf16 %v2223_v23, %v2221_v22  ;;  %v2352_v22 = vld [vmem:[#allocation7 + $0x140] sm:$0xff]  ;;  %v2353_v23 = vld [vmem:[#allocation7 + $0x148] sm:$0xff] }
0x1206   : > { %v3236_v21 = vpack.c.bf16 %v2224_v20, %v2222_v19  ;;  %v2368_v19 = vld [vmem:[#allocation7 + $0x1c0] sm:$0xff] }
0x1207   : > { %2963 = vmatmul.mubr.msk.f32.vlgmr.msra.gmra.mrb[12].mxu1 %vm896_vm2, %v2000_v25  ;;  %v2226_v25 = vld [vmem:[#allocation5 + $0x188] sm:$0xff] }
0x1208   : > { %2997 = vmatprep.mubr.msk.f32.mxu1 %vm3569_vm0, %v3568_v57  ;;  %3202 = vmatpush3.bf16.msra.mxu1 %v3201_v33  ;;  %v2638_v57 = vld [vmem:[%s4170_s6 + $0xa0] sm:$0xff]  ;;  %v3240_v30 = vpack.c.bf16 %v2228_v28, %v2226_v25  ;;  %v2227_v33 = vld [vmem:[#allocation5 + $0x190] sm:$0xff]  ;;  %v2371_v28 = vld [vmem:[#allocation7 + $0x1d8] sm:$0xff] }
0x1209   : > { %3203 = vmatprep.subr.bf16.mxu1 %v3567_v5  ;;  %v3207_v62 = vpack.c.bf16 %v2639_v36, %v2638_v57  ;;  %v2232_v57 = vld [vmem:[#allocation5 + $0x1b8] sm:$0xff]  ;;  %v2229_v36 = vld [vmem:[#allocation5 + $0x1a0] sm:$0xff]  ;;  %v2370_v25 = vld [vmem:[#allocation7 + $0x1d0] sm:$0xff] }
0x120a   : > { %v3244_v37 = vpack.c.bf16 %v2232_v57, %v2230_v34  ;;  %v2355_v34 = vld [vmem:[#allocation7 + $0x158] sm:$0xff]  ;;  %v2373_v57 = vld [vmem:[#allocation7 + $0x1e8] sm:$0xff] }
0x120c   : > { %3205 = vmatpush3.bf16.msra.mxu1 %v3204_v35  ;;  %v3242_v35 = vpack.c.bf16 %v2227_v33, %v2225_v32  ;;  %v3276_v32 = vpack.c.bf16 %v2371_v28, %v2370_v25  ;;  %v2354_v33 = vld [vmem:[#allocation7 + $0x150] sm:$0xff] }
0x120d   : > { %3206 = vmatprep.subr.bf16.mxu1 %v3567_v5 }
0x1210   : > { %3208 = vmatpush3.bf16.msra.mxu1 %v3207_v62  ;;  %v2231_v62 = vld [vmem:[#allocation5 + $0x1b0] sm:$0xff] }
0x1211   : > { %3209 = vmatprep.subr.bf16.mxu1 %v3567_v5  ;;  %v3246_v40 = vpack.c.bf16 %v2231_v62, %v2229_v36  ;;  %v3278_v36 = vpack.c.bf16 %v2355_v34, %v2354_v33 }
0x1214   : > { %3211 = vmatpush3.bf16.msra.mxu1 %v3210_v39  ;;  %v2236_v39 = vld [vmem:[#allocation5 + $0x1d8] sm:$0xff] }
0x1215   : > { %3212 = vmatprep.subr.bf16.mxu1 %v3567_v5  ;;  %v3248_v41 = vpack.c.bf16 %v2236_v39, %v2234_v38  ;;  %v2357_v38 = vld [vmem:[#allocation7 + $0x168] sm:$0xff]  ;;  %v2374_v39 = vld [vmem:[#allocation7 + $0x1f0] sm:$0xff] }
0x1218   : > { %3214 = vmatpush3.bf16.msra.mxu1 %v3213_v42  ;;  %v2233_v42 = vld [vmem:[#allocation5 + $0x1c0] sm:$0xff] }
0x1219   : > { %3215 = vmatprep.subr.bf16.mxu1 %v3567_v5  ;;  %v3250_v47 = vpack.c.bf16 %v2235_v43, %v2233_v42  ;;  %v2358_v43 = vld [vmem:[#allocation7 + $0x170] sm:$0xff] }
0x121c   : > { %3217 = vmatpush3.bf16.msra.mxu1 %v3216_v46  ;;  %v2240_v46 = vld [vmem:[#allocation5 + $0x1f8] sm:$0xff] }
0x121d   : > { %3218 = vmatprep.subr.bf16.mxu1 %v3567_v5  ;;  %v3252_v49 = vpack.c.bf16 %v2240_v46, %v2238_v44  ;;  %v2359_v44 = vld [vmem:[#allocation7 + $0x178] sm:$0xff] }
0x121e   : > { %v3286_v46 = vpack.c.bf16 %v2359_v44, %v2358_v43 }
0x1220   : > { %3220 = vmatpush3.bf16.msra.mxu1 %v3219_v50  ;;  %v2237_v50 = vld [vmem:[#allocation5 + $0x1e0] sm:$0xff] }
0x1221   : > { %3221 = vmatprep.subr.bf16.mxu1 %v3567_v5  ;;  %v2210_v5 = vld [vmem:[#allocation5 + $0x108] sm:$0xff]  ;;  %v3254_v52 = vpack.c.bf16 %v2239_v51, %v2237_v50 }
0x1222   : > { %v3224_v1 = vpack.c.bf16 %v2212_v26, %v2210_v5  ;;  %v2654_v5 = vld [vmem:[%s4172_s8 + $0x1] ss:$0 sm:$0xff] }
0x1224   : > { %3223 = vmatpush3.bf16.msra.mxu1 %v3222_v53  ;;  %3225 = vmatprep.subr.bf16.mxu0 %v3224_v1  ;;  %v2360_v53 = vld [vmem:[#allocation7 + $0x180] sm:$0xff] }
0x1225   : > { %3227 = vmatpush1.bf16.msra.mxu0 %v3226_v4  ;;  %v3260_v4 = vpack.c.bf16 %v2363_v24, %v2362_v3 }
0x1226   : > { %3229 = vmatprep.subr.bf16.mxu0 %v3228_v6  ;;  %v2346_v6 = vld [vmem:[#allocation7 + $0x110] sm:$0xff] }
0x12da   : > { %v2074_v54 = vpop.f32.mrb[12].mxu1 }
0x12db   : > { %2079 = vrot.lane.b32.xlu1 %v2074_v54, %s3570_s29  ;;  %v2964_v55 = vpop.f32.mrb[13].mxu1  ;;  %v2361_v54 = vld [vmem:[#allocation7 + $0x188] sm:$0xff]  ;;  %s566_s29 = scalar_lea.vmem [#allocation8], %s565_s19 }
0x12dc   : > { %v2344_v55 = vld [vmem:[#allocation7 + $0x100] sm:$0xff]  ;;  %s2506_s21 = sshll.u32 %s566_s29, 4  ;;  %s4124_s21 = int_to_ptr.vmem [resolvable:$true] %s2506_s21 }
0x12dd   : > { %s3486_s23 = scalar_lea.vmem %s4124_s21, 16  ;;  %p3493_p4 = scmp.lt.s32.totalorder %s4124_s21, %s3491_s20 }
0x12de   : > { %p3487_p12 = scmp.ne.s32.totalorder %s4124_s21, %s3486_s23  ;;  %p3494_p7 = scmp.lt.s32.totalorder %s3492_s22, %s3486_s23 }
0x12e0   : > { %p3488_p2 = pnand %p3487_p12, %p4223_p1  ;;  %p3495_p8 = por %p3494_p7, %p3493_p4 }
0x12e2   : > { %p3489_p3 = pneg %p3488_p2 }
0x12e4   : > { %p3496_p11 = pnand %p3495_p8, %p3489_p3 }
0x134d   : > { %v2080_v56 = vpop.permute.xlu1 %2079 }
0x134e   : > { %v2082_v58 = vsel %vm819_vm1, %v4021_v11, %v2080_v56  ;;  %v3230_v11 = vpack.c.bf16 %v2215_v8, %v2213_v7  ;;  %v3256_v56 = vpack.c.bf16 %v2361_v54, %v2360_v53  ;;  %v2347_v7 = vld [vmem:[#allocation7 + $0x118] sm:$0xff] }
0x134f   : > { %2998 = vmatmul.mubr.f32.vlgmr.msra.gmra.mrb[14].mxu1 %v2082_v58  ;;  %v2345_v58 = vld [vmem:[#allocation7 + $0x108] sm:$0xff]  ;;  %v3262_v8 = vpack.c.bf16 %v2347_v7, %v2346_v6 }
0x1350   : > { %3231 = vmatpush1.bf16.msra.mxu0 %v3230_v11  ;;  %3257 = vmatprep.subr.bf16.mxu1 %v3256_v56  ;;  %v3264_v11 = vpack.c.bf16 %v2365_v10, %v2364_v9 }
0x1351   : > { %3233 = vmatprep.subr.bf16.mxu0 %v3232_v12  ;;  %v2348_v12 = vld [vmem:[#allocation7 + $0x120] sm:$0xff] }
0x1422   : > { %v2174_v60 = vpop.f32.mrb[14].mxu1 }
0x1423   : > { %v2175_v61 = vadd.f32 %v2651_v59, %v2174_v60  ;;  %v2999_v63 = vpop.f32.mrb[15].mxu1  ;;  %v3258_v59 = vpack.c.bf16 %v2345_v58, %v2344_v55 }
0x1425   : > { %v2178_v0 = vadd.f32 %v2175_v61, %v3988_v48  ;;  %v2217_v48 = vld [vmem:[#allocation5 + $0x140] sm:$0xff]  ;;  %3259 = vmatpush3.bf16.msra.mxu1 %v3258_v59 }
0x1426   : > { %v3234_v14 = vpack.c.bf16 %v2219_v13, %v2217_v48  ;;  %3261 = vmatprep.subr.bf16.mxu1 %v3260_v4  ;;  %v2349_v48 = vld [vmem:[#allocation7 + $0x128] sm:$0xff] }
0x1427   : > { %2183 = vadd.xlane.f32.xlu1 %v2178_v0  ;;  %v3266_v13 = vpack.c.bf16 %v2349_v48, %v2348_v12 }
0x1428   : > { %3235 = vmatpush1.bf16.msra.mxu0 %v3234_v14  ;;  %v2366_v14 = vld [vmem:[#allocation7 + $0x1b0] sm:$0xff] }
0x1429   : > { %3237 = vmatprep.subr.bf16.mxu0 %v3236_v21  ;;  %3263 = vmatpush3.bf16.msra.mxu1 %v3262_v8  ;;  %v2369_v21 = vld [vmem:[#allocation7 + $0x1c8] sm:$0xff]  ;;  %v2658_v8 = vld [vmem:[%s4177_s13 + $0x1] ss:$0 sm:$0xff] }
0x142a   : > { %3265 = vmatprep.subr.bf16.mxu1 %v3264_v11 }
0x142c   : > { %3239 = vmatpush1.bf16.msra.mxu0 %v3238_v45  ;;  %v3272_v45 = vpack.c.bf16 %v2369_v21, %v2368_v19 }
0x142d   : > { %3241 = vmatprep.subr.bf16.mxu0 %v3240_v30  ;;  %3267 = vmatpush3.bf16.msra.mxu1 %v3266_v13  ;;  %v3274_v30 = vpack.c.bf16 %v2353_v23, %v2352_v22 }
0x1430   : > { %3243 = vmatpush1.bf16.msra.mxu0 %v3242_v35  ;;  %v2372_v35 = vld [vmem:[#allocation7 + $0x1e0] sm:$0xff] }
0x1431   : > { %3245 = vmatprep.subr.bf16.mxu0 %v3244_v37  ;;  %v3280_v62 = vpack.c.bf16 %v2373_v57, %v2372_v35  ;;  %v2356_v37 = vld [vmem:[#allocation7 + $0x160] sm:$0xff] }
0x1434   : > { %3247 = vmatpush1.bf16.msra.mxu0 %v3246_v40  ;;  %v2375_v40 = vld [vmem:[#allocation7 + $0x1f8] sm:$0xff] }
0x1435   : > { %3249 = vmatprep.subr.bf16.mxu0 %v3248_v41  ;;  %v3282_v41 = vpack.c.bf16 %v2357_v38, %v2356_v37  ;;  %v3284_v42 = vpack.c.bf16 %v2375_v40, %v2374_v39 }
0x1438   : > { %3251 = vmatpush1.bf16.msra.mxu0 %v3250_v47  ;;  %v2656_v47 = vld [vmem:[%s4175_s11 + $0x2] sm:$0x3] }
0x1439   : > { %3253 = vmatprep.subr.bf16.mxu0 %v3252_v49  ;;  %v2247_v49 = vrot.slane %v2656_v47, %v3836_v27  ;;  %v2251_v50 = vrot.slane %v2656_v47, %v3842_v29 }
0x143c   : > { %3255 = vmatpush1.bf16.msra.mxu0 %v3254_v52 }
0x14b4   : > { %v2184_v15 = vpop.xlane.xlu1 %2183 }
0x14b5   : > { %v2185_v16 = vmul.f32 0.0078125, %v2184_v15  ;;  %v2367_v15 = vld [vmem:[#allocation7 + $0x1b8] sm:$0xff] }
0x14b7   : > { %v2186_v17 = vsub.f32 %v2178_v0, %v2185_v16  ;;  %v3268_v16 = vpack.c.bf16 %v2367_v15, %v2366_v14 }
0x14b9   : > { %v2187_v18 = vmul.f32 %v2186_v17, %v2186_v17  ;;  %3269 = vmatprep.subr.bf16.mxu1 %v3268_v16 }
0x14bb   : > { %2188 = vadd.xlane.f32.xlu0 %v2187_v18  ;;  %v2351_v18 = vld [vmem:[#allocation7 + $0x138] sm:$0xff] }
0x1548   : > { %v2189_v60 = vpop.xlane.xlu0 %2188 }
0x1549   : > { %v2190_v61 = vmul.f32 0.0078125, %v2189_v60 }
0x154b   : > { %v2191_v63 = vadd.f32 1e-12, %v2190_v61 }
0x154d   : > { %3394 = vrsqrt.f32 %v2191_v63 }
0x1557   : > { %v3395_v0 = vpop.eup %3394 }
0x1558   : > { %v2193_v26 = vmul.f32 %v3395_v0, %v2186_v17  ;;  %v2350_v17 = vld [vmem:[#allocation7 + $0x130] sm:$0xff] }
0x1559   : > { %v3270_v20 = vpack.c.bf16 %v2351_v18, %v2350_v17 }
0x155a   : > { %v2200_v1 = vmul.f32 %v2654_v5, %v2193_v26 }
0x155b   : > { %3271 = vmatpush3.bf16.msra.mxu1 %v3270_v20  ;;  %v2661_v20 = vld [vmem:[%s4178_s14 + $0x1] ss:$0 sm:$0xff] }
0x155c   : > { %v4099_v2 = vadd.f32 %v2655_v31, %v2200_v1  ;;  %3273 = vmatprep.subr.bf16.mxu1 %v3272_v45 }
0x155e   : > { %2319 = vmatmul.mubr.f32.vlgmr.msra.gmra.mrb[16].mxu0 %v4099_v2 }
0x155f   : > { %3275 = vmatpush3.bf16.msra.mxu1 %v3274_v30 }
0x1560   : > { %3277 = vmatprep.subr.bf16.mxu1 %v3276_v32 }
0x1563   : > { %3279 = vmatpush3.bf16.msra.mxu1 %v3278_v36 }
0x1564   : > { %3281 = vmatprep.subr.bf16.mxu1 %v3280_v62 }
0x1567   : > { %3283 = vmatpush3.bf16.msra.mxu1 %v3282_v41 }
0x1568   : > { %3285 = vmatprep.subr.bf16.mxu1 %v3284_v42 }
0x156b   : > { %3287 = vmatpush3.bf16.msra.mxu1 %v3286_v46 }
0x1631   : > { %v2320_v51 = vpop.f32.mrb[16].mxu0 }
0x1632   : > { %v2321_v52 = vadd.f32 %v2320_v51, %v2247_v49  ;;  %v2322_v53 = vpop.f32.mrb[17].mxu0 }
0x1633   : > { %v2323_v54 = vadd.f32 %v2322_v53, %v2251_v50 }
0x1634   : > { %v2327_v55 = vmul.f32 0.044715, %v2321_v52  ;;  %v2325_v24 = vmul.f32 0.5, %v2321_v52 }
0x1635   : > { %v2328_v56 = vmul.f32 0.044715, %v2323_v54  ;;  %v2326_v29 = vmul.f32 0.5, %v2323_v54 }
0x1636   : > { %v2329_v58 = vmul.f32 %v2327_v55, %v2321_v52 }
0x1637   : > { %v2330_v59 = vmul.f32 %v2328_v56, %v2323_v54 }
0x1638   : > { %v2331_v60 = vmul.f32 %v2329_v58, %v2321_v52 }
0x1639   : > { %v2332_v61 = vmul.f32 %v2330_v59, %v2323_v54 }
0x163a   : > { %v2333_v63 = vadd.f32 %v2331_v60, %v2321_v52 }
0x163b   : > { %v2334_v0 = vadd.f32 %v2332_v61, %v2323_v54 }
0x163c   : > { %v2335_v5 = vmul.f32 0.7978846, %v2333_v63 }
0x163d   : > { %v2336_v26 = vmul.f32 0.7978846, %v2334_v0 }
0x163e   : > { %3396 = vtanh.f32 %v2335_v5 }
0x163f   : > { %3398 = vtanh.f32 %v2336_v26 }
0x1648   : > { %v3397_v31 = vpop.eup %3396 }
0x1649   : > { %v3399_v27 = vpop.eup %3398  ;;  %v2339_v1 = vadd.f32 1.0, %v3397_v31 }
0x164a   : > { %v2340_v3 = vadd.f32 1.0, %v3399_v27 }
0x164b   : > { %v2341_v6 = vmul.f32 %v2339_v1, %v2325_v24 }
0x164c   : > { %v2342_v4 = vmul.f32 %v2340_v3, %v2326_v29 }
0x164e   : > { %2448 = vmatprep.mubr.f32.mxu1 %v2342_v4 }
0x164f   : > { %2449 = vmatmul.mubr.f32.vlgmr.msra.gmra.mrb[16].mxu1 %v2341_v6 }
0x1722   : > { %v2817_v7 = vpop.f32.mrb[16].mxu1 }
0x1723   : > { %v2818_v9 = vpop.f32.mrb[17].mxu1 }
0x1724   : > { %v2819_v10 = vadd.f32 %v2818_v9, %v2817_v7 }
0x1726   : > { %v2451_v11 = vadd.f32 %v2819_v10, %v2658_v8 }
0x1728   : > { %v2454_v12 = vadd.f32 %v2451_v11, %v4099_v2  ;;  %v2662_v2 = vld [vmem:[%s4219_s15 + $0x1] ss:$0 sm:$0xff] }
0x172a   : > { %2459 = vadd.xlane.f32.xlu0 %v2454_v12 }
0x17b7   : > { %v2460_v48 = vpop.xlane.xlu0 %2459 }
0x17b8   : > { %v2461_v13 = vmul.f32 0.0078125, %v2460_v48 }
0x17ba   : > { %v2462_v14 = vsub.f32 %v2454_v12, %v2461_v13 }
0x17bc   : > { %v2463_v15 = vmul.f32 %v2462_v14, %v2462_v14 }
0x17be   : > { %2464 = vadd.xlane.f32.xlu1 %v2463_v15 }
0x184b   : > { %v2465_v16 = vpop.xlane.xlu1 %2464 }
0x184c   : > { %v2466_v17 = vmul.f32 0.0078125, %v2465_v16 }
0x184e   : > { %v2467_v18 = vadd.f32 1e-12, %v2466_v17 }
0x1850   : > { %3400 = vrsqrt.f32 %v2467_v18 }
0x185a   : > { %v3401_v19 = vpop.eup %3400 }
0x185b   : > { %v2469_v21 = vmul.f32 %v3401_v19, %v2462_v14 }
0x185d   : > { %v2476_v22 = vmul.f32 %v2661_v20, %v2469_v21 }
0x185f   : > { %v2483_v23 = vadd.f32 %v2662_v2, %v2476_v22 }
0x1861   : > { %v2484_v45 = vrot.slane %v2483_v23, 4 }
0x1863   : > { %v2485_v25 = vadd.f32 %v2484_v45, %v2483_v23 }
0x1865   : > { %v2486_v28 = vrot.slane %v2485_v25, 2 }
0x1867   : > { %v2487_v30 = vadd.f32 %v2486_v28, %v2485_v25 }
0x1869   : > { %v2488_v32 = vrot.slane %v2487_v30, 1 }
0x186b   : > { %v2489_v33 = vadd.f32 %v2488_v32, %v2487_v30 }
0x186d   : > { %v2491_v34 = vmul.f32 0.125, %v2489_v33 }
0x186f   : > { %2492 = vst [vmem:[%s566_s29] sm:$0x1] %v2491_v34 }
0x1870   : > { %3499 = shalt.err (!%p3496_p11)
}
0x1871   : > { %s3500_s16 = scalar_lea.hbm %s4122_s17, 16  ;;  %s3504_s19 = scalar_lea.hbm %s4222_s27, 32 }
0x1872   : > { %p3501_p13 = scmp.ne.s32.totalorder %s4122_s17, %s3500_s16  ;;  %p3505_p6 = scmp.lt.u32.totalorder %s4122_s17, %s4222_s27 }
0x1873   : > { %p3506_p9 = scmp.lt.u32.totalorder %s3504_s19, %s3500_s16  ;;  %p3508_p12 = scmp.lt.u32.totalorder %s3500_s16, %s4122_s17 }
0x1874   : > { %p3502_p5 = pnand %p3501_p13, %p4223_p1 }
0x1875   : > { %p3507_p10 = por %p3506_p9, %p3505_p6 }
0x1876   : > { %p3503_p0 = pneg %p3502_p5 }
0x1877   : > { %p3509_p2 = por %p3508_p12, %p3507_p10 }
0x1879   : > { %p3510_p3 = pnand %p3509_p2, %p3503_p0 }
0x187b   : > { %3513 = shalt.err (!%p3510_p3)
}
0x187c   : > { %3300 = dma.vmem_to_hbm [thread:$0]  (%p4223_p1), %s4124_s21, 16, %s4122_s17, %s2494_s28  }
0x187d PF: > { %s4224_s30 = sld [smem:[#allocation15_spill]]  ;;  %s4225_s24 = sld [smem:[#allocation12_spill]] }
0x187e   : > { %s4226_s23 = sld [smem:[#allocation19_spill]] }
0x1883   : > { %p3322_p4 = scmp.ge.s32.totalorder %s4224_s30, 2  ;;  %s2518_s25 = sand.u32 1, %s4225_s24  }
0x1884   : > { %p4227_p7 = scmp.ne.s32.totalorder %s4226_s23, 0  ;;  %s2519_s20 = scalar_lea.sflag [#allocation4], %s2518_s25 }
0x1886   : > { %p3313_p8 = pnand %p3322_p4, %p4227_p7 }
0x1888   : > { %3539 = dma.done.wait (!%p3313_p8), %s2519_s20, 16  }
0x1889   : > { %3541 = vsyncadd (!%p3313_p8), %s2519_s20, 4294967280  ;;  %s4228_s24 = sld [smem:[#allocation16_spill]]  ;;  %s4229_s21 = sld [smem:[#allocation13_spill]] }
0x188a   : > { %s4230_s22 = sld [smem:[#allocation14_spill]]  ;;  %s4231_s23 = sld [smem:[#allocation17_spill]] }
0x188f   : > { %p28_p11 = scmp.ge.s32.totalorder %s4228_s24, 4  }
0x1891   :  { %30 = sbr.rel (!%p28_p11) target bundleno = 10 (0xa), region = 147 }
0x1898   :  { %2523 = vsyncpa [#allocation3], 1 }
0x1899   :  { %2525 = vsyncpa [#allocation3 + $0x1], 1 }
0x189a   :  { %2526 = vsyncpa [#allocation6], 1 }
0x189b   :  { %2527 = vsyncpa [#allocation4], 1 }
0x189c   :  { %2529 = vsyncpa [#allocation4 + $0x1], 1 }

</bundles_post_ra>
